<compile_context>
chip_gen: v7x
topology: tpu7x:2x2x1
jax: 0.10.0
libtpu: 0.0.40
codegen_flags: <defaults>
</compile_context>

<pallas_src>
import jax
import jax.numpy as jnp
from jax import lax
from jax.experimental import pallas as pl
from jax.experimental.pallas import tpu as pltpu


# ----------------------------------------------------------------------------
# helpers
# ----------------------------------------------------------------------------
def _pick_block(total, target, multiple=1):
    """Largest divisor of `total` that is <= target and a multiple of `multiple`.
    Falls back to `total` (full extent) so BlockSpec constraints always hold."""
    best = None
    for d in range(1, total + 1):
        if total % d == 0 and d <= target and d % multiple == 0:
            best = d
    return best if best is not None else total


# ----------------------------------------------------------------------------
# Kernel A: fused gated TemporalConv #1 + ChebConv (sym, lambda_max=2) + ReLU
# ----------------------------------------------------------------------------
def _make_tc1_cheb_kernel(k, K, N, B, t_blk, cdt):
    def kernel(x_ref, wt_ref, bt_ref, l_ref, wc_ref, bc_ref, o_ref):
        # x_ref : (T_in, M, C_in)   full input slab, M = B*N (batch-major), cdt
        # wt_ref: (k*C_in, 3*H)     stacked conv1/conv2/conv3 weights, cdt
        # bt_ref: (1, 3*H)          f32 biases
        # l_ref : (N, N)            scaled Laplacian  L_hat = 2L/lmax - I, cdt
        # wc_ref: (K*H, H)          stacked Chebyshev weights, cdt
        # bc_ref: (1, H)            f32
        # o_ref : (t_blk, M, H)     output block at time-block program_id(0)
        H = wc_ref.shape[1]
        t0 = pl.program_id(0) * t_blk
        lhat = l_ref[...]
        wt = wt_ref[...]
        wc = wc_ref[...]
        bt = bt_ref[...]
        bc = bc_ref[...]

        for dt in range(t_blk):                              # static unroll
            # ---- gated temporal conv: single (M, k*C_in) @ (k*C_in, 3H) matmul
            win = jnp.concatenate(
                [x_ref[t0 + dt + tau] for tau in range(k)], axis=-1)
            acc = jnp.dot(win, wt, preferred_element_type=jnp.float32) + bt
            p = acc[:, :H]
            q = jax.nn.sigmoid(acc[:, H:2 * H])
            r = acc[:, 2 * H:]
            h1 = jnp.maximum(p * q + r, 0.0)                 # (M, H), f32

            # ---- ChebConv, batched over B:
            # node-rows form (N, B*H): column b*H + h holds batch b, feature h
            x_nb = jnp.concatenate(
                [h1[b * N:(b + 1) * N, :] for b in range(B)], axis=-1)
            txs = [x_nb]
            if K > 1:
                txs.append(jnp.dot(lhat, x_nb.astype(cdt),
                                   preferred_element_type=jnp.float32))
                for _ in range(2, K):
                    txs.append(
                        2.0 * jnp.dot(lhat, txs[-1].astype(cdt),
                                      preferred_element_type=jnp.float32)
                        - txs[-2])
            # stack [Tx_0 .. Tx_{K-1}] along channels -> (M, K*H), one matmul
            z = jnp.concatenate(
                [jnp.concatenate([t[:, b * H:(b + 1) * H] for t in txs], axis=-1)
                 for b in range(B)], axis=0)
            out = jnp.dot(z.astype(cdt), wc,
                          preferred_element_type=jnp.float32) + bc
            o_ref[dt] = jnp.maximum(out, 0.0).astype(o_ref.dtype)   # relu
    return kernel


def temporal1_cheb(x_slab, wt, bt, lhat, wc, bc, *, k, K, N, B, compute_dtype):
    t_in, m, c_in = x_slab.shape
    H = wc.shape[1]
    t_out = t_in - (k - 1)
    t_blk = _pick_block(t_out, 8)
    kernel = _make_tc1_cheb_kernel(k, K, N, B, t_blk, compute_dtype)
    return pl.pallas_call(
        kernel,
        out_shape=jax.ShapeDtypeStruct((t_out, m, H), compute_dtype),
        grid=(t_out // t_blk,),
        in_specs=[
            pl.BlockSpec((t_in, m, c_in), lambda i: (0, 0, 0)),
            pl.BlockSpec((k * c_in, 3 * H), lambda i: (0, 0)),
            pl.BlockSpec((1, 3 * H), lambda i: (0, 0)),
            pl.BlockSpec((N, N), lambda i: (0, 0)),
            pl.BlockSpec((K * H, H), lambda i: (0, 0)),
            pl.BlockSpec((1, H), lambda i: (0, 0)),
        ],
        out_specs=pl.BlockSpec((t_blk, m, H), lambda i: (i, 0, 0)),
        compiler_params=pltpu.CompilerParams(
            dimension_semantics=("parallel",),
            vmem_limit_bytes=64 * 1024 * 1024,
        ),
    )(x_slab, wt, bt, lhat, wc, bc)


# ----------------------------------------------------------------------------
# Kernel B: gated temporal conv #2 (tiled over M and output-time blocks)
# ----------------------------------------------------------------------------
def _make_tc2_kernel(k, t_blk):
    def kernel(x_ref, w_ref, b_ref, o_ref):
        # x_ref: (T_in, TM, H) cdt ; w_ref: (k*H, 3*C) cdt ; b_ref: (1, 3*C) f32
        # o_ref: (t_blk, TM, C) f32
        c = o_ref.shape[2]
        t0 = pl.program_id(1) * t_blk
        w = w_ref[...]
        b = b_ref[...]
        for dt in range(t_blk):                              # static unroll
            win = jnp.concatenate(
                [x_ref[t0 + dt + tau] for tau in range(k)], axis=-1)
            acc = jnp.dot(win, w, preferred_element_type=jnp.float32) + b
            p = acc[:, :c]
            q = jax.nn.sigmoid(acc[:, c:2 * c])
            r = acc[:, 2 * c:]
            o_ref[dt] = jnp.maximum(p * q + r, 0.0).astype(o_ref.dtype)
    return kernel


def gated_temporal_conv(x_slab, w, b, *, k):
    t_in, m, h = x_slab.shape
    c_out = w.shape[1] // 3
    t_out = t_in - (k - 1)
    t_blk = _pick_block(t_out, 8)
    tm = _pick_block(m, 512, 8)          # M tile: multiple of 8 (or full M)
    kernel = _make_tc2_kernel(k, t_blk)
    return pl.pallas_call(
        kernel,
        out_shape=jax.ShapeDtypeStruct((t_out, m, c_out), jnp.float32),
        grid=(m // tm, t_out // t_blk),
        in_specs=[
            pl.BlockSpec((t_in, tm, h), lambda mi, ti: (0, mi, 0)),
            pl.BlockSpec((k * h, 3 * c_out), lambda mi, ti: (0, 0)),
            pl.BlockSpec((1, 3 * c_out), lambda mi, ti: (0, 0)),
        ],
        out_specs=pl.BlockSpec((t_blk, tm, c_out), lambda mi, ti: (ti, mi, 0)),
        compiler_params=pltpu.CompilerParams(
            dimension_semantics=("parallel", "parallel"),
            vmem_limit_bytes=64 * 1024 * 1024,
        ),
    )(x_slab, w, b)


# ----------------------------------------------------------------------------
# Kernel C: BatchNorm2d(num_nodes), training-mode batch statistics
# ----------------------------------------------------------------------------
def _bn_kernel(x_ref, o_ref):
    # x_ref: (TN, L) -- one row per graph node; normalize each row.
    x = x_ref[...].astype(jnp.float32)
    mean = jnp.mean(x, axis=1, keepdims=True)
    var = jnp.maximum(jnp.mean(x * x, axis=1, keepdims=True) - mean * mean, 0.0)
    o_ref[...] = ((x - mean) * lax.rsqrt(var + 1e-5)).astype(o_ref.dtype)
    # TODO(synk): running-mean/var buffer updates are framework state, not compute.


def batch_norm_per_node(x_nodes):
    n, l = x_nodes.shape
    tn = _pick_block(n, 32, 8)           # node tile: multiple of 8 (or full N)
    return pl.pallas_call(
        _bn_kernel,
        out_shape=jax.ShapeDtypeStruct((n, l), jnp.float32),
        grid=(n // tn,),
        in_specs=[pl.BlockSpec((tn, l), lambda i: (i, 0))],
        out_specs=pl.BlockSpec((tn, l), lambda i: (i, 0)),
        compiler_params=pltpu.CompilerParams(dimension_semantics=("parallel",)),
    )(x_nodes)


# ----------------------------------------------------------------------------
# Glue: parameter packing, scaled Laplacian, full forward
# ----------------------------------------------------------------------------
def stack_temporal_weights(w1, w2, w3, b1, b2, b3):
    # w*: (O, I, 1, k) Conv2d weights  ->  (k*I, 3*O);  biases -> (1, 3*O)
    w = jnp.concatenate([w1, w2, w3], axis=0)            # (3O, I, 1, k)
    w = jnp.transpose(w[:, :, 0, :], (2, 1, 0))          # (k, I, 3O)
    kk, ii, oo = w.shape
    w = w.reshape(kk * ii, oo)                           # row tau*I + i
    b = jnp.concatenate([b1, b2, b3], axis=0)[None, :]   # (1, 3O)
    return w, b


def scaled_laplacian_sym(edge_index, edge_weight, n):
    # ChebConv 'sym' normalization with default lambda_max = 2:
    #   L_hat = 2L/lambda_max - I = -D^{-1/2} A D^{-1/2}
    src, dst = edge_index[0], edge_index[1]
    a = jnp.zeros((n, n), jnp.float32).at[dst, src].add(edge_weight)
    deg = jnp.zeros((n,), jnp.float32).at[src].add(edge_weight)
    dinv = jnp.where(deg > 0, 1.0 / jnp.sqrt(deg), 0.0)
    return -(dinv[:, None] * a * dinv[None, :])


def stconv_forward(params, x, lhat, *, k, K, compute_dtype=jnp.bfloat16):
    # x: (B, T_in, N, C_in) -- PyTorch input convention
    B, T_in, N, C_in = x.shape
    cdt = compute_dtype
    # batch-major flattened slab: (T, B*N, C)
    x_slab = jnp.transpose(x, (1, 0, 2, 3)).reshape(T_in, B * N, C_in).astype(cdt)

    wt1 = params["tc1_w"].astype(cdt)
    wt2 = params["tc2_w"].astype(cdt)
    wc = params["cheb_w"].reshape(K * params["cheb_w"].shape[1],
                                  params["cheb_w"].shape[2]).astype(cdt)
    lh = lhat.astype(cdt)

    # fused: temporal conv #1 -> ChebConv -> relu
    h2 = temporal1_cheb(x_slab, wt1, params["tc1_b"], lh, wc, params["cheb_b"],
                        k=k, K=K, N=N, B=B, compute_dtype=cdt)     # (T1, B*N, H)
    # temporal conv #2
    h3 = gated_temporal_conv(h2, wt2, params["tc2_b"], k=k)        # (T2, B*N, C)

    T2, _, C_out = h3.shape
    # BatchNorm2d(num_nodes): per-node stats over (batch, time, channel)
    h_nodes = jnp.transpose(h3.reshape(T2, B, N, C_out),
                            (2, 0, 1, 3)).reshape(N, T2 * B * C_out)
    h_bn = batch_norm_per_node(h_nodes)
    out = jnp.transpose(h_bn.reshape(N, T2, B, C_out), (2, 1, 0, 3))
    return out                                                     # (B, T2, N, C)


# ----------------------------------------------------------------------------
# Pure-JAX f32 reference (XLA conv / einsum) for validation
# ----------------------------------------------------------------------------
def reference_forward(raw, x, lhat):
    hi = lax.Precision.HIGHEST

    def temporal(x_btnc, w1, b1, w2, b2, w3, b3):
        xp = jnp.transpose(x_btnc, (0, 3, 2, 1))   # (B, C, N, T)

        def conv(w, b):
            y = lax.conv_general_dilated(xp, w, (1, 1), "VALID",
                                         dimension_numbers=("NCHW", "OIHW", "NCHW"),
                                         precision=hi)
            return y + b[None, :, None, None]

        P = conv(w1, b1)
        Q = jax.nn.sigmoid(conv(w2, b2))
        R = conv(w3, b3)
        H = jnp.maximum(P * Q + R, 0.0)
        return jnp.transpose(H, (0, 3, 2, 1))      # (B, T_out, N, O)

    def cheb(h, w, b):                              # h: (B, T, N, F)
        K = w.shape[0]
        tx0 = h
        out = jnp.einsum("btnf,fo->btno", tx0, w[0], precision=hi)
        if K > 1:
            tx1 = jnp.einsum("ij,btjf->btif", lhat, tx0, precision=hi)
            out = out + jnp.einsum("btnf,fo->btno", tx1, w[1], precision=hi)
            txp, txc = tx0, tx1
            for kk in range(2, K):
                txn = 2.0 * jnp.einsum("ij,btjf->btif", lhat, txc, precision=hi) - txp
                out = out + jnp.einsum("btnf,fo->btno", txn, w[kk], precision=hi)
                txp, txc = txc, txn
        return out + b[None, None, None, :]

    def bn(h):                                      # (B, T, N, C), BatchNorm2d over N
        hp = jnp.transpose(h, (0, 2, 1, 3))
        mean = jnp.mean(hp, axis=(0, 2, 3), keepdims=True)
        var = jnp.mean((hp - mean) ** 2, axis=(0, 2, 3), keepdims=True)
        hn = (hp - mean) / jnp.sqrt(var + 1e-5)
        return jnp.transpose(hn, (0, 2, 1, 3))

    t0 = temporal(x, *raw["tc1"])
    t1 = jnp.maximum(cheb(t0, raw["cheb_w"], raw["cheb_b"]), 0.0)
    t2 = temporal(t1, *raw["tc2"])
    return bn(t2)


# ----------------------------------------------------------------------------
if __name__ == "__main__":
    key = jax.random.PRNGKey(0)
    B, T_in, N, C_in = 2, 8, 8, 4
    hidden, C_out, k_size, K = 16, 16, 3, 3

    keys = jax.random.split(key, 16)
    x = jax.random.normal(keys[0], (B, T_in, N, C_in), jnp.float32)

    s = 0.2

    def cw(kk, o, i):
        return jax.random.normal(kk, (o, i, 1, k_size), jnp.float32) * s

    def cb(kk, o):
        return jax.random.normal(kk, (o,), jnp.float32) * s

    # TemporalConv1: three Conv2d(in=C_in, out=hidden, kernel=(1,k))
    tc1 = [cw(keys[1], hidden, C_in), cb(keys[2], hidden),
           cw(keys[3], hidden, C_in), cb(keys[4], hidden),
           cw(keys[5], hidden, C_in), cb(keys[6], hidden)]
    # TemporalConv2: three Conv2d(in=hidden, out=C_out, kernel=(1,k))
    tc2 = [cw(keys[7], C_out, hidden), cb(keys[8], C_out),
           cw(keys[9], C_out, hidden), cb(keys[10], C_out),
           cw(keys[11], C_out, hidden), cb(keys[12], C_out)]
    # ChebConv(hidden -> hidden, K) weights + bias
    cheb_w = jax.random.normal(keys[13], (K, hidden, hidden), jnp.float32) * s
    cheb_b = jax.random.normal(keys[14], (hidden,), jnp.float32) * s

    # Deterministic undirected ring graph on N nodes, unit edge weights
    src = jnp.arange(N, dtype=jnp.int32)
    dst = (src + 1) % N
    edge_index = jnp.stack([jnp.concatenate([src, dst]), jnp.concatenate([dst, src])])
    edge_weight = jnp.ones((2 * N,), jnp.float32)
    lhat = scaled_laplacian_sym(edge_index, edge_weight, N)

    tc1_w, tc1_b = stack_temporal_weights(tc1[0], tc1[2], tc1[4], tc1[1], tc1[3], tc1[5])
    tc2_w, tc2_b = stack_temporal_weights(tc2[0], tc2[2], tc2[4], tc2[1], tc2[3], tc2[5])
    params = dict(tc1_w=tc1_w, tc1_b=tc1_b, tc2_w=tc2_w, tc2_b=tc2_b,
                  cheb_w=cheb_w, cheb_b=cheb_b[None, :])

    raw = dict(tc1=tc1, tc2=tc2, cheb_w=cheb_w, cheb_b=cheb_b)
    ref = reference_forward(raw, x, lhat)

    # exact-path check (f32 matmuls) against the f32 reference
    out_f32 = stconv_forward(params, x, lhat, k=k_size, K=K,
                             compute_dtype=jnp.float32)
    out_f32 = jax.block_until_ready(out_f32)
    assert out_f32.shape == (B, T_in - 2 * (k_size - 1), N, C_out), out_f32.shape
    assert jnp.allclose(out_f32, ref, atol=2e-3, rtol=2e-3), \
        float(jnp.max(jnp.abs(out_f32 - ref)))

    # performance path: bf16 matmul operands, f32 accumulation / gating / BN
    out_bf16 = stconv_forward(params, x, lhat, k=k_size, K=K,
                              compute_dtype=jnp.bfloat16)
    out_bf16 = jax.block_until_ready(out_bf16)
    rel = float(jnp.linalg.norm(out_bf16 - ref) / jnp.linalg.norm(ref))
    assert rel < 0.1, rel

    print("KERNEL_OK")
</pallas_src>

<mosaic_0001>
module attributes {stable_mosaic.version = 11 : i64} {
  func.func @kernel(%arg0: i32, %arg1: memref<8x16x4xf32, #tpu.memory_space<vmem>>, %arg2: memref<12x48xf32, #tpu.memory_space<vmem>>, %arg3: memref<1x48xf32, #tpu.memory_space<vmem>>, %arg4: memref<8x8xf32, #tpu.memory_space<vmem>>, %arg5: memref<48x16xf32, #tpu.memory_space<vmem>>, %arg6: memref<1x16xf32, #tpu.memory_space<vmem>>, %arg7: memref<6x16x16xf32, #tpu.memory_space<vmem>>) attributes {dimension_semantics = [#tpu.dimension_semantics<parallel>], iteration_bounds = array<i64: 1>, scalar_prefetch = 0 : i64, scratch_operands = 0 : i64, tpu.core_type = #tpu.core_type<tc>, window_params = [{pipeline_mode = #tpu.pipeline_mode<synchronous>, transform_indices = @transform_0, window_bounds = array<i64: 8, 16, 4>}, {pipeline_mode = #tpu.pipeline_mode<synchronous>, transform_indices = @transform_1, window_bounds = array<i64: 12, 48>}, {pipeline_mode = #tpu.pipeline_mode<synchronous>, transform_indices = @transform_2, window_bounds = array<i64: 1, 48>}, {pipeline_mode = #tpu.pipeline_mode<synchronous>, transform_indices = @transform_3, window_bounds = array<i64: 8, 8>}, {pipeline_mode = #tpu.pipeline_mode<synchronous>, transform_indices = @transform_4, window_bounds = array<i64: 48, 16>}, {pipeline_mode = #tpu.pipeline_mode<synchronous>, transform_indices = @transform_5, window_bounds = array<i64: 1, 16>}, {transform_indices = @transform_6, window_bounds = array<i64: 6, 16, 16>}]} {
    %c6_i32 = arith.constant 6 : i32
    %0 = arith.muli %arg0, %c6_i32 : i32
    %c0 = arith.constant 0 : index
    %c0_0 = arith.constant 0 : index
    %1 = vector.load %arg4[%c0, %c0_0] : memref<8x8xf32, #tpu.memory_space<vmem>>, vector<8x8xf32>
    %c0_1 = arith.constant 0 : index
    %c0_2 = arith.constant 0 : index
    %2 = vector.load %arg2[%c0_1, %c0_2] : memref<12x48xf32, #tpu.memory_space<vmem>>, vector<12x48xf32>
    %c0_3 = arith.constant 0 : index
    %c0_4 = arith.constant 0 : index
    %3 = vector.load %arg5[%c0_3, %c0_4] : memref<48x16xf32, #tpu.memory_space<vmem>>, vector<48x16xf32>
    %c0_5 = arith.constant 0 : index
    %c0_6 = arith.constant 0 : index
    %4 = vector.load %arg3[%c0_5, %c0_6] : memref<1x48xf32, #tpu.memory_space<vmem>>, vector<1x48xf32>
    %c0_7 = arith.constant 0 : index
    %c0_8 = arith.constant 0 : index
    %5 = vector.load %arg6[%c0_7, %c0_8] : memref<1x16xf32, #tpu.memory_space<vmem>>, vector<1x16xf32>
    %c0_i32 = arith.constant 0 : i32
    %6 = arith.addi %0, %c0_i32 : i32
    %c0_i32_9 = arith.constant 0 : i32
    %7 = arith.addi %6, %c0_i32_9 : i32
    %8 = arith.index_cast %7 : i32 to index
    %c0_10 = arith.constant 0 : index
    %c0_11 = arith.constant 0 : index
    %9 = vector.load %arg1[%8, %c0_10, %c0_11] : memref<8x16x4xf32, #tpu.memory_space<vmem>>, vector<1x16x4xf32>
    %10 = vector.shape_cast %9 : vector<1x16x4xf32> to vector<16x4xf32>
    %c0_i32_12 = arith.constant 0 : i32
    %11 = arith.addi %0, %c0_i32_12 : i32
    %c1_i32 = arith.constant 1 : i32
    %12 = arith.addi %11, %c1_i32 : i32
    %13 = arith.index_cast %12 : i32 to index
    %c0_13 = arith.constant 0 : index
    %c0_14 = arith.constant 0 : index
    %14 = vector.load %arg1[%13, %c0_13, %c0_14] : memref<8x16x4xf32, #tpu.memory_space<vmem>>, vector<1x16x4xf32>
    %15 = vector.shape_cast %14 : vector<1x16x4xf32> to vector<16x4xf32>
    %c0_i32_15 = arith.constant 0 : i32
    %16 = arith.addi %0, %c0_i32_15 : i32
    %c2_i32 = arith.constant 2 : i32
    %17 = arith.addi %16, %c2_i32 : i32
    %18 = arith.index_cast %17 : i32 to index
    %c0_16 = arith.constant 0 : index
    %c0_17 = arith.constant 0 : index
    %19 = vector.load %arg1[%18, %c0_16, %c0_17] : memref<8x16x4xf32, #tpu.memory_space<vmem>>, vector<1x16x4xf32>
    %20 = vector.shape_cast %19 : vector<1x16x4xf32> to vector<16x4xf32>
    %21 = tpu.concatenate %10, %15, %20 in 1 : vector<16x4xf32>, vector<16x4xf32>, vector<16x4xf32> -> vector<16x12xf32>
    %cst = arith.constant dense<0.000000e+00> : vector<16x48xf32>
    %22 = tpu.matmul %21, %2, %cst {dimension_numbers = #tpu.dot_dimension_numbers<[1], [0], [0], [1], [0, 0, 1, 1], [], []>} : vector<16x12xf32>, vector<12x48xf32>, vector<16x48xf32> -> vector<16x48xf32>
    %23 = vector.broadcast %4 : vector<1x48xf32> to vector<16x48xf32>
    %24 = arith.addf %22, %23 : vector<16x48xf32>
    %25 = vector.extract_strided_slice %24 {offsets = [0, 0], sizes = [16, 16], strides = [1, 1]} : vector<16x48xf32> to vector<16x16xf32>
    %26 = vector.extract_strided_slice %24 {offsets = [0, 16], sizes = [16, 16], strides = [1, 1]} : vector<16x48xf32> to vector<16x16xf32>
    %27 = arith.negf %26 : vector<16x16xf32>
    %28 = math.exp %27 : vector<16x16xf32>
    %cst_18 = arith.constant 1.000000e+00 : f32
    %29 = vector.broadcast %cst_18 : f32 to vector<16x16xf32>
    %30 = arith.addf %29, %28 : vector<16x16xf32>
    %31 = arith.divf %29, %30 : vector<16x16xf32>
    %32 = vector.extract_strided_slice %24 {offsets = [0, 32], sizes = [16, 16], strides = [1, 1]} : vector<16x48xf32> to vector<16x16xf32>
    %33 = arith.mulf %25, %31 : vector<16x16xf32>
    %34 = arith.addf %33, %32 : vector<16x16xf32>
    %cst_19 = arith.constant 0.000000e+00 : f32
    %35 = vector.broadcast %cst_19 : f32 to vector<16x16xf32>
    %36 = arith.maximumf %34, %35 : vector<16x16xf32>
    %37 = vector.extract_strided_slice %36 {offsets = [0, 0], sizes = [8, 16], strides = [1, 1]} : vector<16x16xf32> to vector<8x16xf32>
    %38 = vector.extract_strided_slice %36 {offsets = [8, 0], sizes = [8, 16], strides = [1, 1]} : vector<16x16xf32> to vector<8x16xf32>
    %39 = tpu.concatenate %37, %38 in 1 : vector<8x16xf32>, vector<8x16xf32> -> vector<8x32xf32>
    %cst_20 = arith.constant dense<0.000000e+00> : vector<8x32xf32>
    %40 = tpu.matmul %1, %39, %cst_20 {dimension_numbers = #tpu.dot_dimension_numbers<[1], [0], [0], [1], [0, 0, 1, 1], [], []>} : vector<8x8xf32>, vector<8x32xf32>, vector<8x32xf32> -> vector<8x32xf32>
    %cst_21 = arith.constant dense<0.000000e+00> : vector<8x32xf32>
    %41 = tpu.matmul %1, %40, %cst_21 {dimension_numbers = #tpu.dot_dimension_numbers<[1], [0], [0], [1], [0, 0, 1, 1], [], []>} : vector<8x8xf32>, vector<8x32xf32>, vector<8x32xf32> -> vector<8x32xf32>
    %cst_22 = arith.constant 2.000000e+00 : f32
    %42 = vector.broadcast %cst_22 : f32 to vector<8x32xf32>
    %43 = arith.mulf %42, %41 : vector<8x32xf32>
    %44 = arith.subf %43, %39 : vector<8x32xf32>
    %45 = vector.extract_strided_slice %39 {offsets = [0, 0], sizes = [8, 16], strides = [1, 1]} : vector<8x32xf32> to vector<8x16xf32>
    %46 = vector.extract_strided_slice %40 {offsets = [0, 0], sizes = [8, 16], strides = [1, 1]} : vector<8x32xf32> to vector<8x16xf32>
    %47 = vector.extract_strided_slice %44 {offsets = [0, 0], sizes = [8, 16], strides = [1, 1]} : vector<8x32xf32> to vector<8x16xf32>
    %48 = tpu.concatenate %45, %46, %47 in 1 : vector<8x16xf32>, vector<8x16xf32>, vector<8x16xf32> -> vector<8x48xf32>
    %49 = vector.extract_strided_slice %39 {offsets = [0, 16], sizes = [8, 16], strides = [1, 1]} : vector<8x32xf32> to vector<8x16xf32>
    %50 = vector.extract_strided_slice %40 {offsets = [0, 16], sizes = [8, 16], strides = [1, 1]} : vector<8x32xf32> to vector<8x16xf32>
    %51 = vector.extract_strided_slice %44 {offsets = [0, 16], sizes = [8, 16], strides = [1, 1]} : vector<8x32xf32> to vector<8x16xf32>
    %52 = tpu.concatenate %49, %50, %51 in 1 : vector<8x16xf32>, vector<8x16xf32>, vector<8x16xf32> -> vector<8x48xf32>
    %53 = tpu.concatenate %48, %52 in 0 : vector<8x48xf32>, vector<8x48xf32> -> vector<16x48xf32>
    %cst_23 = arith.constant dense<0.000000e+00> : vector<16x16xf32>
    %54 = tpu.matmul %53, %3, %cst_23 {dimension_numbers = #tpu.dot_dimension_numbers<[1], [0], [0], [1], [0, 0, 1, 1], [], []>} : vector<16x48xf32>, vector<48x16xf32>, vector<16x16xf32> -> vector<16x16xf32>
    %55 = vector.broadcast %5 : vector<1x16xf32> to vector<16x16xf32>
    %56 = arith.addf %54, %55 : vector<16x16xf32>
    %cst_24 = arith.constant 0.000000e+00 : f32
    %57 = vector.broadcast %cst_24 : f32 to vector<16x16xf32>
    %58 = arith.maximumf %56, %57 : vector<16x16xf32>
    %c0_25 = arith.constant 0 : index
    %c0_26 = arith.constant 0 : index
    %c0_27 = arith.constant 0 : index
    %59 = vector.load %arg7[%c0_25, %c0_26, %c0_27] : memref<6x16x16xf32, #tpu.memory_space<vmem>>, vector<1x16x16xf32>
    %60 = vector.shape_cast %59 : vector<1x16x16xf32> to vector<16x16xf32>
    %61 = vector.shape_cast %58 : vector<16x16xf32> to vector<1x16x16xf32>
    tpu.vector_store %arg7[%c0_25, %c0_26, %c0_27], %61 {strides = array<i32>} : memref<6x16x16xf32, #tpu.memory_space<vmem>>, vector<1x16x16xf32>,
    %c1_i32_28 = arith.constant 1 : i32
    %62 = arith.addi %0, %c1_i32_28 : i32
    %c0_i32_29 = arith.constant 0 : i32
    %63 = arith.addi %62, %c0_i32_29 : i32
    %64 = arith.index_cast %63 : i32 to index
    %c0_30 = arith.constant 0 : index
    %c0_31 = arith.constant 0 : index
    %65 = vector.load %arg1[%64, %c0_30, %c0_31] : memref<8x16x4xf32, #tpu.memory_space<vmem>>, vector<1x16x4xf32>
    %66 = vector.shape_cast %65 : vector<1x16x4xf32> to vector<16x4xf32>
    %c1_i32_32 = arith.constant 1 : i32
    %67 = arith.addi %0, %c1_i32_32 : i32
    %c1_i32_33 = arith.constant 1 : i32
    %68 = arith.addi %67, %c1_i32_33 : i32
    %69 = arith.index_cast %68 : i32 to index
    %c0_34 = arith.constant 0 : index
    %c0_35 = arith.constant 0 : index
    %70 = vector.load %arg1[%69, %c0_34, %c0_35] : memref<8x16x4xf32, #tpu.memory_space<vmem>>, vector<1x16x4xf32>
    %71 = vector.shape_cast %70 : vector<1x16x4xf32> to vector<16x4xf32>
    %c1_i32_36 = arith.constant 1 : i32
    %72 = arith.addi %0, %c1_i32_36 : i32
    %c2_i32_37 = arith.constant 2 : i32
    %73 = arith.addi %72, %c2_i32_37 : i32
    %74 = arith.index_cast %73 : i32 to index
    %c0_38 = arith.constant 0 : index
    %c0_39 = arith.constant 0 : index
    %75 = vector.load %arg1[%74, %c0_38, %c0_39] : memref<8x16x4xf32, #tpu.memory_space<vmem>>, vector<1x16x4xf32>
    %76 = vector.shape_cast %75 : vector<1x16x4xf32> to vector<16x4xf32>
    %77 = tpu.concatenate %66, %71, %76 in 1 : vector<16x4xf32>, vector<16x4xf32>, vector<16x4xf32> -> vector<16x12xf32>
    %cst_40 = arith.constant dense<0.000000e+00> : vector<16x48xf32>
    %78 = tpu.matmul %77, %2, %cst_40 {dimension_numbers = #tpu.dot_dimension_numbers<[1], [0], [0], [1], [0, 0, 1, 1], [], []>} : vector<16x12xf32>, vector<12x48xf32>, vector<16x48xf32> -> vector<16x48xf32>
    %79 = vector.broadcast %4 : vector<1x48xf32> to vector<16x48xf32>
    %80 = arith.addf %78, %79 : vector<16x48xf32>
    %81 = vector.extract_strided_slice %80 {offsets = [0, 0], sizes = [16, 16], strides = [1, 1]} : vector<16x48xf32> to vector<16x16xf32>
    %82 = vector.extract_strided_slice %80 {offsets = [0, 16], sizes = [16, 16], strides = [1, 1]} : vector<16x48xf32> to vector<16x16xf32>
    %83 = arith.negf %82 : vector<16x16xf32>
    %84 = math.exp %83 : vector<16x16xf32>
    %cst_41 = arith.constant 1.000000e+00 : f32
    %85 = vector.broadcast %cst_41 : f32 to vector<16x16xf32>
    %86 = arith.addf %85, %84 : vector<16x16xf32>
    %87 = arith.divf %85, %86 : vector<16x16xf32>
    %88 = vector.extract_strided_slice %80 {offsets = [0, 32], sizes = [16, 16], strides = [1, 1]} : vector<16x48xf32> to vector<16x16xf32>
    %89 = arith.mulf %81, %87 : vector<16x16xf32>
    %90 = arith.addf %89, %88 : vector<16x16xf32>
    %cst_42 = arith.constant 0.000000e+00 : f32
    %91 = vector.broadcast %cst_42 : f32 to vector<16x16xf32>
    %92 = arith.maximumf %90, %91 : vector<16x16xf32>
    %93 = vector.extract_strided_slice %92 {offsets = [0, 0], sizes = [8, 16], strides = [1, 1]} : vector<16x16xf32> to vector<8x16xf32>
    %94 = vector.extract_strided_slice %92 {offsets = [8, 0], sizes = [8, 16], strides = [1, 1]} : vector<16x16xf32> to vector<8x16xf32>
    %95 = tpu.concatenate %93, %94 in 1 : vector<8x16xf32>, vector<8x16xf32> -> vector<8x32xf32>
    %cst_43 = arith.constant dense<0.000000e+00> : vector<8x32xf32>
    %96 = tpu.matmul %1, %95, %cst_43 {dimension_numbers = #tpu.dot_dimension_numbers<[1], [0], [0], [1], [0, 0, 1, 1], [], []>} : vector<8x8xf32>, vector<8x32xf32>, vector<8x32xf32> -> vector<8x32xf32>
    %cst_44 = arith.constant dense<0.000000e+00> : vector<8x32xf32>
    %97 = tpu.matmul %1, %96, %cst_44 {dimension_numbers = #tpu.dot_dimension_numbers<[1], [0], [0], [1], [0, 0, 1, 1], [], []>} : vector<8x8xf32>, vector<8x32xf32>, vector<8x32xf32> -> vector<8x32xf32>
    %cst_45 = arith.constant 2.000000e+00 : f32
    %98 = vector.broadcast %cst_45 : f32 to vector<8x32xf32>
    %99 = arith.mulf %98, %97 : vector<8x32xf32>
    %100 = arith.subf %99, %95 : vector<8x32xf32>
    %101 = vector.extract_strided_slice %95 {offsets = [0, 0], sizes = [8, 16], strides = [1, 1]} : vector<8x32xf32> to vector<8x16xf32>
    %102 = vector.extract_strided_slice %96 {offsets = [0, 0], sizes = [8, 16], strides = [1, 1]} : vector<8x32xf32> to vector<8x16xf32>
    %103 = vector.extract_strided_slice %100 {offsets = [0, 0], sizes = [8, 16], strides = [1, 1]} : vector<8x32xf32> to vector<8x16xf32>
    %104 = tpu.concatenate %101, %102, %103 in 1 : vector<8x16xf32>, vector<8x16xf32>, vector<8x16xf32> -> vector<8x48xf32>
    %105 = vector.extract_strided_slice %95 {offsets = [0, 16], sizes = [8, 16], strides = [1, 1]} : vector<8x32xf32> to vector<8x16xf32>
    %106 = vector.extract_strided_slice %96 {offsets = [0, 16], sizes = [8, 16], strides = [1, 1]} : vector<8x32xf32> to vector<8x16xf32>
    %107 = vector.extract_strided_slice %100 {offsets = [0, 16], sizes = [8, 16], strides = [1, 1]} : vector<8x32xf32> to vector<8x16xf32>
    %108 = tpu.concatenate %105, %106, %107 in 1 : vector<8x16xf32>, vector<8x16xf32>, vector<8x16xf32> -> vector<8x48xf32>
    %109 = tpu.concatenate %104, %108 in 0 : vector<8x48xf32>, vector<8x48xf32> -> vector<16x48xf32>
    %cst_46 = arith.constant dense<0.000000e+00> : vector<16x16xf32>
    %110 = tpu.matmul %109, %3, %cst_46 {dimension_numbers = #tpu.dot_dimension_numbers<[1], [0], [0], [1], [0, 0, 1, 1], [], []>} : vector<16x48xf32>, vector<48x16xf32>, vector<16x16xf32> -> vector<16x16xf32>
    %111 = vector.broadcast %5 : vector<1x16xf32> to vector<16x16xf32>
    %112 = arith.addf %110, %111 : vector<16x16xf32>
    %cst_47 = arith.constant 0.000000e+00 : f32
    %113 = vector.broadcast %cst_47 : f32 to vector<16x16xf32>
    %114 = arith.maximumf %112, %113 : vector<16x16xf32>
    %c1 = arith.constant 1 : index
    %c0_48 = arith.constant 0 : index
    %c0_49 = arith.constant 0 : index
    %115 = vector.load %arg7[%c1, %c0_48, %c0_49] : memref<6x16x16xf32, #tpu.memory_space<vmem>>, vector<1x16x16xf32>
    %116 = vector.shape_cast %115 : vector<1x16x16xf32> to vector<16x16xf32>
    %117 = vector.shape_cast %114 : vector<16x16xf32> to vector<1x16x16xf32>
    tpu.vector_store %arg7[%c1, %c0_48, %c0_49], %117 {strides = array<i32>} : memref<6x16x16xf32, #tpu.memory_space<vmem>>, vector<1x16x16xf32>,
    %c2_i32_50 = arith.constant 2 : i32
    %118 = arith.addi %0, %c2_i32_50 : i32
    %c0_i32_51 = arith.constant 0 : i32
    %119 = arith.addi %118, %c0_i32_51 : i32
    %120 = arith.index_cast %119 : i32 to index
    %c0_52 = arith.constant 0 : index
    %c0_53 = arith.constant 0 : index
    %121 = vector.load %arg1[%120, %c0_52, %c0_53] : memref<8x16x4xf32, #tpu.memory_space<vmem>>, vector<1x16x4xf32>
    %122 = vector.shape_cast %121 : vector<1x16x4xf32> to vector<16x4xf32>
    %c2_i32_54 = arith.constant 2 : i32
    %123 = arith.addi %0, %c2_i32_54 : i32
    %c1_i32_55 = arith.constant 1 : i32
    %124 = arith.addi %123, %c1_i32_55 : i32
    %125 = arith.index_cast %124 : i32 to index
    %c0_56 = arith.constant 0 : index
    %c0_57 = arith.constant 0 : index
    %126 = vector.load %arg1[%125, %c0_56, %c0_57] : memref<8x16x4xf32, #tpu.memory_space<vmem>>, vector<1x16x4xf32>
    %127 = vector.shape_cast %126 : vector<1x16x4xf32> to vector<16x4xf32>
    %c2_i32_58 = arith.constant 2 : i32
    %128 = arith.addi %0, %c2_i32_58 : i32
    %c2_i32_59 = arith.constant 2 : i32
    %129 = arith.addi %128, %c2_i32_59 : i32
    %130 = arith.index_cast %129 : i32 to index
    %c0_60 = arith.constant 0 : index
    %c0_61 = arith.constant 0 : index
    %131 = vector.load %arg1[%130, %c0_60, %c0_61] : memref<8x16x4xf32, #tpu.memory_space<vmem>>, vector<1x16x4xf32>
    %132 = vector.shape_cast %131 : vector<1x16x4xf32> to vector<16x4xf32>
    %133 = tpu.concatenate %122, %127, %132 in 1 : vector<16x4xf32>, vector<16x4xf32>, vector<16x4xf32> -> vector<16x12xf32>
    %cst_62 = arith.constant dense<0.000000e+00> : vector<16x48xf32>
    %134 = tpu.matmul %133, %2, %cst_62 {dimension_numbers = #tpu.dot_dimension_numbers<[1], [0], [0], [1], [0, 0, 1, 1], [], []>} : vector<16x12xf32>, vector<12x48xf32>, vector<16x48xf32> -> vector<16x48xf32>
    %135 = vector.broadcast %4 : vector<1x48xf32> to vector<16x48xf32>
    %136 = arith.addf %134, %135 : vector<16x48xf32>
    %137 = vector.extract_strided_slice %136 {offsets = [0, 0], sizes = [16, 16], strides = [1, 1]} : vector<16x48xf32> to vector<16x16xf32>
    %138 = vector.extract_strided_slice %136 {offsets = [0, 16], sizes = [16, 16], strides = [1, 1]} : vector<16x48xf32> to vector<16x16xf32>
    %139 = arith.negf %138 : vector<16x16xf32>
    %140 = math.exp %139 : vector<16x16xf32>
    %cst_63 = arith.constant 1.000000e+00 : f32
    %141 = vector.broadcast %cst_63 : f32 to vector<16x16xf32>
    %142 = arith.addf %141, %140 : vector<16x16xf32>
    %143 = arith.divf %141, %142 : vector<16x16xf32>
    %144 = vector.extract_strided_slice %136 {offsets = [0, 32], sizes = [16, 16], strides = [1, 1]} : vector<16x48xf32> to vector<16x16xf32>
    %145 = arith.mulf %137, %143 : vector<16x16xf32>
    %146 = arith.addf %145, %144 : vector<16x16xf32>
    %cst_64 = arith.constant 0.000000e+00 : f32
    %147 = vector.broadcast %cst_64 : f32 to vector<16x16xf32>
    %148 = arith.maximumf %146, %147 : vector<16x16xf32>
    %149 = vector.extract_strided_slice %148 {offsets = [0, 0], sizes = [8, 16], strides = [1, 1]} : vector<16x16xf32> to vector<8x16xf32>
    %150 = vector.extract_strided_slice %148 {offsets = [8, 0], sizes = [8, 16], strides = [1, 1]} : vector<16x16xf32> to vector<8x16xf32>
    %151 = tpu.concatenate %149, %150 in 1 : vector<8x16xf32>, vector<8x16xf32> -> vector<8x32xf32>
    %cst_65 = arith.constant dense<0.000000e+00> : vector<8x32xf32>
    %152 = tpu.matmul %1, %151, %cst_65 {dimension_numbers = #tpu.dot_dimension_numbers<[1], [0], [0], [1], [0, 0, 1, 1], [], []>} : vector<8x8xf32>, vector<8x32xf32>, vector<8x32xf32> -> vector<8x32xf32>
    %cst_66 = arith.constant dense<0.000000e+00> : vector<8x32xf32>
    %153 = tpu.matmul %1, %152, %cst_66 {dimension_numbers = #tpu.dot_dimension_numbers<[1], [0], [0], [1], [0, 0, 1, 1], [], []>} : vector<8x8xf32>, vector<8x32xf32>, vector<8x32xf32> -> vector<8x32xf32>
    %cst_67 = arith.constant 2.000000e+00 : f32
    %154 = vector.broadcast %cst_67 : f32 to vector<8x32xf32>
    %155 = arith.mulf %154, %153 : vector<8x32xf32>
    %156 = arith.subf %155, %151 : vector<8x32xf32>
    %157 = vector.extract_strided_slice %151 {offsets = [0, 0], sizes = [8, 16], strides = [1, 1]} : vector<8x32xf32> to vector<8x16xf32>
    %158 = vector.extract_strided_slice %152 {offsets = [0, 0], sizes = [8, 16], strides = [1, 1]} : vector<8x32xf32> to vector<8x16xf32>
    %159 = vector.extract_strided_slice %156 {offsets = [0, 0], sizes = [8, 16], strides = [1, 1]} : vector<8x32xf32> to vector<8x16xf32>
    %160 = tpu.concatenate %157, %158, %159 in 1 : vector<8x16xf32>, vector<8x16xf32>, vector<8x16xf32> -> vector<8x48xf32>
    %161 = vector.extract_strided_slice %151 {offsets = [0, 16], sizes = [8, 16], strides = [1, 1]} : vector<8x32xf32> to vector<8x16xf32>
    %162 = vector.extract_strided_slice %152 {offsets = [0, 16], sizes = [8, 16], strides = [1, 1]} : vector<8x32xf32> to vector<8x16xf32>
    %163 = vector.extract_strided_slice %156 {offsets = [0, 16], sizes = [8, 16], strides = [1, 1]} : vector<8x32xf32> to vector<8x16xf32>
    %164 = tpu.concatenate %161, %162, %163 in 1 : vector<8x16xf32>, vector<8x16xf32>, vector<8x16xf32> -> vector<8x48xf32>
    %165 = tpu.concatenate %160, %164 in 0 : vector<8x48xf32>, vector<8x48xf32> -> vector<16x48xf32>
    %cst_68 = arith.constant dense<0.000000e+00> : vector<16x16xf32>
    %166 = tpu.matmul %165, %3, %cst_68 {dimension_numbers = #tpu.dot_dimension_numbers<[1], [0], [0], [1], [0, 0, 1, 1], [], []>} : vector<16x48xf32>, vector<48x16xf32>, vector<16x16xf32> -> vector<16x16xf32>
    %167 = vector.broadcast %5 : vector<1x16xf32> to vector<16x16xf32>
    %168 = arith.addf %166, %167 : vector<16x16xf32>
    %cst_69 = arith.constant 0.000000e+00 : f32
    %169 = vector.broadcast %cst_69 : f32 to vector<16x16xf32>
    %170 = arith.maximumf %168, %169 : vector<16x16xf32>
    %c2 = arith.constant 2 : index
    %c0_70 = arith.constant 0 : index
    %c0_71 = arith.constant 0 : index
    %171 = vector.load %arg7[%c2, %c0_70, %c0_71] : memref<6x16x16xf32, #tpu.memory_space<vmem>>, vector<1x16x16xf32>
    %172 = vector.shape_cast %171 : vector<1x16x16xf32> to vector<16x16xf32>
    %173 = vector.shape_cast %170 : vector<16x16xf32> to vector<1x16x16xf32>
    tpu.vector_store %arg7[%c2, %c0_70, %c0_71], %173 {strides = array<i32>} : memref<6x16x16xf32, #tpu.memory_space<vmem>>, vector<1x16x16xf32>,
    %c3_i32 = arith.constant 3 : i32
    %174 = arith.addi %0, %c3_i32 : i32
    %c0_i32_72 = arith.constant 0 : i32
    %175 = arith.addi %174, %c0_i32_72 : i32
    %176 = arith.index_cast %175 : i32 to index
    %c0_73 = arith.constant 0 : index
    %c0_74 = arith.constant 0 : index
    %177 = vector.load %arg1[%176, %c0_73, %c0_74] : memref<8x16x4xf32, #tpu.memory_space<vmem>>, vector<1x16x4xf32>
    %178 = vector.shape_cast %177 : vector<1x16x4xf32> to vector<16x4xf32>
    %c3_i32_75 = arith.constant 3 : i32
    %179 = arith.addi %0, %c3_i32_75 : i32
    %c1_i32_76 = arith.constant 1 : i32
    %180 = arith.addi %179, %c1_i32_76 : i32
    %181 = arith.index_cast %180 : i32 to index
    %c0_77 = arith.constant 0 : index
    %c0_78 = arith.constant 0 : index
    %182 = vector.load %arg1[%181, %c0_77, %c0_78] : memref<8x16x4xf32, #tpu.memory_space<vmem>>, vector<1x16x4xf32>
    %183 = vector.shape_cast %182 : vector<1x16x4xf32> to vector<16x4xf32>
    %c3_i32_79 = arith.constant 3 : i32
    %184 = arith.addi %0, %c3_i32_79 : i32
    %c2_i32_80 = arith.constant 2 : i32
    %185 = arith.addi %184, %c2_i32_80 : i32
    %186 = arith.index_cast %185 : i32 to index
    %c0_81 = arith.constant 0 : index
    %c0_82 = arith.constant 0 : index
    %187 = vector.load %arg1[%186, %c0_81, %c0_82] : memref<8x16x4xf32, #tpu.memory_space<vmem>>, vector<1x16x4xf32>
    %188 = vector.shape_cast %187 : vector<1x16x4xf32> to vector<16x4xf32>
    %189 = tpu.concatenate %178, %183, %188 in 1 : vector<16x4xf32>, vector<16x4xf32>, vector<16x4xf32> -> vector<16x12xf32>
    %cst_83 = arith.constant dense<0.000000e+00> : vector<16x48xf32>
    %190 = tpu.matmul %189, %2, %cst_83 {dimension_numbers = #tpu.dot_dimension_numbers<[1], [0], [0], [1], [0, 0, 1, 1], [], []>} : vector<16x12xf32>, vector<12x48xf32>, vector<16x48xf32> -> vector<16x48xf32>
    %191 = vector.broadcast %4 : vector<1x48xf32> to vector<16x48xf32>
    %192 = arith.addf %190, %191 : vector<16x48xf32>
    %193 = vector.extract_strided_slice %192 {offsets = [0, 0], sizes = [16, 16], strides = [1, 1]} : vector<16x48xf32> to vector<16x16xf32>
    %194 = vector.extract_strided_slice %192 {offsets = [0, 16], sizes = [16, 16], strides = [1, 1]} : vector<16x48xf32> to vector<16x16xf32>
    %195 = arith.negf %194 : vector<16x16xf32>
    %196 = math.exp %195 : vector<16x16xf32>
    %cst_84 = arith.constant 1.000000e+00 : f32
    %197 = vector.broadcast %cst_84 : f32 to vector<16x16xf32>
    %198 = arith.addf %197, %196 : vector<16x16xf32>
    %199 = arith.divf %197, %198 : vector<16x16xf32>
    %200 = vector.extract_strided_slice %192 {offsets = [0, 32], sizes = [16, 16], strides = [1, 1]} : vector<16x48xf32> to vector<16x16xf32>
    %201 = arith.mulf %193, %199 : vector<16x16xf32>
    %202 = arith.addf %201, %200 : vector<16x16xf32>
    %cst_85 = arith.constant 0.000000e+00 : f32
    %203 = vector.broadcast %cst_85 : f32 to vector<16x16xf32>
    %204 = arith.maximumf %202, %203 : vector<16x16xf32>
    %205 = vector.extract_strided_slice %204 {offsets = [0, 0], sizes = [8, 16], strides = [1, 1]} : vector<16x16xf32> to vector<8x16xf32>
    %206 = vector.extract_strided_slice %204 {offsets = [8, 0], sizes = [8, 16], strides = [1, 1]} : vector<16x16xf32> to vector<8x16xf32>
    %207 = tpu.concatenate %205, %206 in 1 : vector<8x16xf32>, vector<8x16xf32> -> vector<8x32xf32>
    %cst_86 = arith.constant dense<0.000000e+00> : vector<8x32xf32>
    %208 = tpu.matmul %1, %207, %cst_86 {dimension_numbers = #tpu.dot_dimension_numbers<[1], [0], [0], [1], [0, 0, 1, 1], [], []>} : vector<8x8xf32>, vector<8x32xf32>, vector<8x32xf32> -> vector<8x32xf32>
    %cst_87 = arith.constant dense<0.000000e+00> : vector<8x32xf32>
    %209 = tpu.matmul %1, %208, %cst_87 {dimension_numbers = #tpu.dot_dimension_numbers<[1], [0], [0], [1], [0, 0, 1, 1], [], []>} : vector<8x8xf32>, vector<8x32xf32>, vector<8x32xf32> -> vector<8x32xf32>
    %cst_88 = arith.constant 2.000000e+00 : f32
    %210 = vector.broadcast %cst_88 : f32 to vector<8x32xf32>
    %211 = arith.mulf %210, %209 : vector<8x32xf32>
    %212 = arith.subf %211, %207 : vector<8x32xf32>
    %213 = vector.extract_strided_slice %207 {offsets = [0, 0], sizes = [8, 16], strides = [1, 1]} : vector<8x32xf32> to vector<8x16xf32>
    %214 = vector.extract_strided_slice %208 {offsets = [0, 0], sizes = [8, 16], strides = [1, 1]} : vector<8x32xf32> to vector<8x16xf32>
    %215 = vector.extract_strided_slice %212 {offsets = [0, 0], sizes = [8, 16], strides = [1, 1]} : vector<8x32xf32> to vector<8x16xf32>
    %216 = tpu.concatenate %213, %214, %215 in 1 : vector<8x16xf32>, vector<8x16xf32>, vector<8x16xf32> -> vector<8x48xf32>
    %217 = vector.extract_strided_slice %207 {offsets = [0, 16], sizes = [8, 16], strides = [1, 1]} : vector<8x32xf32> to vector<8x16xf32>
    %218 = vector.extract_strided_slice %208 {offsets = [0, 16], sizes = [8, 16], strides = [1, 1]} : vector<8x32xf32> to vector<8x16xf32>
    %219 = vector.extract_strided_slice %212 {offsets = [0, 16], sizes = [8, 16], strides = [1, 1]} : vector<8x32xf32> to vector<8x16xf32>
    %220 = tpu.concatenate %217, %218, %219 in 1 : vector<8x16xf32>, vector<8x16xf32>, vector<8x16xf32> -> vector<8x48xf32>
    %221 = tpu.concatenate %216, %220 in 0 : vector<8x48xf32>, vector<8x48xf32> -> vector<16x48xf32>
    %cst_89 = arith.constant dense<0.000000e+00> : vector<16x16xf32>
    %222 = tpu.matmul %221, %3, %cst_89 {dimension_numbers = #tpu.dot_dimension_numbers<[1], [0], [0], [1], [0, 0, 1, 1], [], []>} : vector<16x48xf32>, vector<48x16xf32>, vector<16x16xf32> -> vector<16x16xf32>
    %223 = vector.broadcast %5 : vector<1x16xf32> to vector<16x16xf32>
    %224 = arith.addf %222, %223 : vector<16x16xf32>
    %cst_90 = arith.constant 0.000000e+00 : f32
    %225 = vector.broadcast %cst_90 : f32 to vector<16x16xf32>
    %226 = arith.maximumf %224, %225 : vector<16x16xf32>
    %c3 = arith.constant 3 : index
    %c0_91 = arith.constant 0 : index
    %c0_92 = arith.constant 0 : index
    %227 = vector.load %arg7[%c3, %c0_91, %c0_92] : memref<6x16x16xf32, #tpu.memory_space<vmem>>, vector<1x16x16xf32>
    %228 = vector.shape_cast %227 : vector<1x16x16xf32> to vector<16x16xf32>
    %229 = vector.shape_cast %226 : vector<16x16xf32> to vector<1x16x16xf32>
    tpu.vector_store %arg7[%c3, %c0_91, %c0_92], %229 {strides = array<i32>} : memref<6x16x16xf32, #tpu.memory_space<vmem>>, vector<1x16x16xf32>,
    %c4_i32 = arith.constant 4 : i32
    %230 = arith.addi %0, %c4_i32 : i32
    %c0_i32_93 = arith.constant 0 : i32
    %231 = arith.addi %230, %c0_i32_93 : i32
    %232 = arith.index_cast %231 : i32 to index
    %c0_94 = arith.constant 0 : index
    %c0_95 = arith.constant 0 : index
    %233 = vector.load %arg1[%232, %c0_94, %c0_95] : memref<8x16x4xf32, #tpu.memory_space<vmem>>, vector<1x16x4xf32>
    %234 = vector.shape_cast %233 : vector<1x16x4xf32> to vector<16x4xf32>
    %c4_i32_96 = arith.constant 4 : i32
    %235 = arith.addi %0, %c4_i32_96 : i32
    %c1_i32_97 = arith.constant 1 : i32
    %236 = arith.addi %235, %c1_i32_97 : i32
    %237 = arith.index_cast %236 : i32 to index
    %c0_98 = arith.constant 0 : index
    %c0_99 = arith.constant 0 : index
    %238 = vector.load %arg1[%237, %c0_98, %c0_99] : memref<8x16x4xf32, #tpu.memory_space<vmem>>, vector<1x16x4xf32>
    %239 = vector.shape_cast %238 : vector<1x16x4xf32> to vector<16x4xf32>
    %c4_i32_100 = arith.constant 4 : i32
    %240 = arith.addi %0, %c4_i32_100 : i32
    %c2_i32_101 = arith.constant 2 : i32
    %241 = arith.addi %240, %c2_i32_101 : i32
    %242 = arith.index_cast %241 : i32 to index
    %c0_102 = arith.constant 0 : index
    %c0_103 = arith.constant 0 : index
    %243 = vector.load %arg1[%242, %c0_102, %c0_103] : memref<8x16x4xf32, #tpu.memory_space<vmem>>, vector<1x16x4xf32>
    %244 = vector.shape_cast %243 : vector<1x16x4xf32> to vector<16x4xf32>
    %245 = tpu.concatenate %234, %239, %244 in 1 : vector<16x4xf32>, vector<16x4xf32>, vector<16x4xf32> -> vector<16x12xf32>
    %cst_104 = arith.constant dense<0.000000e+00> : vector<16x48xf32>
    %246 = tpu.matmul %245, %2, %cst_104 {dimension_numbers = #tpu.dot_dimension_numbers<[1], [0], [0], [1], [0, 0, 1, 1], [], []>} : vector<16x12xf32>, vector<12x48xf32>, vector<16x48xf32> -> vector<16x48xf32>
    %247 = vector.broadcast %4 : vector<1x48xf32> to vector<16x48xf32>
    %248 = arith.addf %246, %247 : vector<16x48xf32>
    %249 = vector.extract_strided_slice %248 {offsets = [0, 0], sizes = [16, 16], strides = [1, 1]} : vector<16x48xf32> to vector<16x16xf32>
    %250 = vector.extract_strided_slice %248 {offsets = [0, 16], sizes = [16, 16], strides = [1, 1]} : vector<16x48xf32> to vector<16x16xf32>
    %251 = arith.negf %250 : vector<16x16xf32>
    %252 = math.exp %251 : vector<16x16xf32>
    %cst_105 = arith.constant 1.000000e+00 : f32
    %253 = vector.broadcast %cst_105 : f32 to vector<16x16xf32>
    %254 = arith.addf %253, %252 : vector<16x16xf32>
    %255 = arith.divf %253, %254 : vector<16x16xf32>
    %256 = vector.extract_strided_slice %248 {offsets = [0, 32], sizes = [16, 16], strides = [1, 1]} : vector<16x48xf32> to vector<16x16xf32>
    %257 = arith.mulf %249, %255 : vector<16x16xf32>
    %258 = arith.addf %257, %256 : vector<16x16xf32>
    %cst_106 = arith.constant 0.000000e+00 : f32
    %259 = vector.broadcast %cst_106 : f32 to vector<16x16xf32>
    %260 = arith.maximumf %258, %259 : vector<16x16xf32>
    %261 = vector.extract_strided_slice %260 {offsets = [0, 0], sizes = [8, 16], strides = [1, 1]} : vector<16x16xf32> to vector<8x16xf32>
    %262 = vector.extract_strided_slice %260 {offsets = [8, 0], sizes = [8, 16], strides = [1, 1]} : vector<16x16xf32> to vector<8x16xf32>
    %263 = tpu.concatenate %261, %262 in 1 : vector<8x16xf32>, vector<8x16xf32> -> vector<8x32xf32>
    %cst_107 = arith.constant dense<0.000000e+00> : vector<8x32xf32>
    %264 = tpu.matmul %1, %263, %cst_107 {dimension_numbers = #tpu.dot_dimension_numbers<[1], [0], [0], [1], [0, 0, 1, 1], [], []>} : vector<8x8xf32>, vector<8x32xf32>, vector<8x32xf32> -> vector<8x32xf32>
    %cst_108 = arith.constant dense<0.000000e+00> : vector<8x32xf32>
    %265 = tpu.matmul %1, %264, %cst_108 {dimension_numbers = #tpu.dot_dimension_numbers<[1], [0], [0], [1], [0, 0, 1, 1], [], []>} : vector<8x8xf32>, vector<8x32xf32>, vector<8x32xf32> -> vector<8x32xf32>
    %cst_109 = arith.constant 2.000000e+00 : f32
    %266 = vector.broadcast %cst_109 : f32 to vector<8x32xf32>
    %267 = arith.mulf %266, %265 : vector<8x32xf32>
    %268 = arith.subf %267, %263 : vector<8x32xf32>
    %269 = vector.extract_strided_slice %263 {offsets = [0, 0], sizes = [8, 16], strides = [1, 1]} : vector<8x32xf32> to vector<8x16xf32>
    %270 = vector.extract_strided_slice %264 {offsets = [0, 0], sizes = [8, 16], strides = [1, 1]} : vector<8x32xf32> to vector<8x16xf32>
    %271 = vector.extract_strided_slice %268 {offsets = [0, 0], sizes = [8, 16], strides = [1, 1]} : vector<8x32xf32> to vector<8x16xf32>
    %272 = tpu.concatenate %269, %270, %271 in 1 : vector<8x16xf32>, vector<8x16xf32>, vector<8x16xf32> -> vector<8x48xf32>
    %273 = vector.extract_strided_slice %263 {offsets = [0, 16], sizes = [8, 16], strides = [1, 1]} : vector<8x32xf32> to vector<8x16xf32>
    %274 = vector.extract_strided_slice %264 {offsets = [0, 16], sizes = [8, 16], strides = [1, 1]} : vector<8x32xf32> to vector<8x16xf32>
    %275 = vector.extract_strided_slice %268 {offsets = [0, 16], sizes = [8, 16], strides = [1, 1]} : vector<8x32xf32> to vector<8x16xf32>
    %276 = tpu.concatenate %273, %274, %275 in 1 : vector<8x16xf32>, vector<8x16xf32>, vector<8x16xf32> -> vector<8x48xf32>
    %277 = tpu.concatenate %272, %276 in 0 : vector<8x48xf32>, vector<8x48xf32> -> vector<16x48xf32>
    %cst_110 = arith.constant dense<0.000000e+00> : vector<16x16xf32>
    %278 = tpu.matmul %277, %3, %cst_110 {dimension_numbers = #tpu.dot_dimension_numbers<[1], [0], [0], [1], [0, 0, 1, 1], [], []>} : vector<16x48xf32>, vector<48x16xf32>, vector<16x16xf32> -> vector<16x16xf32>
    %279 = vector.broadcast %5 : vector<1x16xf32> to vector<16x16xf32>
    %280 = arith.addf %278, %279 : vector<16x16xf32>
    %cst_111 = arith.constant 0.000000e+00 : f32
    %281 = vector.broadcast %cst_111 : f32 to vector<16x16xf32>
    %282 = arith.maximumf %280, %281 : vector<16x16xf32>
    %c4 = arith.constant 4 : index
    %c0_112 = arith.constant 0 : index
    %c0_113 = arith.constant 0 : index
    %283 = vector.load %arg7[%c4, %c0_112, %c0_113] : memref<6x16x16xf32, #tpu.memory_space<vmem>>, vector<1x16x16xf32>
    %284 = vector.shape_cast %283 : vector<1x16x16xf32> to vector<16x16xf32>
    %285 = vector.shape_cast %282 : vector<16x16xf32> to vector<1x16x16xf32>
    tpu.vector_store %arg7[%c4, %c0_112, %c0_113], %285 {strides = array<i32>} : memref<6x16x16xf32, #tpu.memory_space<vmem>>, vector<1x16x16xf32>,
    %c5_i32 = arith.constant 5 : i32
    %286 = arith.addi %0, %c5_i32 : i32
    %c0_i32_114 = arith.constant 0 : i32
    %287 = arith.addi %286, %c0_i32_114 : i32
    %288 = arith.index_cast %287 : i32 to index
    %c0_115 = arith.constant 0 : index
    %c0_116 = arith.constant 0 : index
    %289 = vector.load %arg1[%288, %c0_115, %c0_116] : memref<8x16x4xf32, #tpu.memory_space<vmem>>, vector<1x16x4xf32>
    %290 = vector.shape_cast %289 : vector<1x16x4xf32> to vector<16x4xf32>
    %c5_i32_117 = arith.constant 5 : i32
    %291 = arith.addi %0, %c5_i32_117 : i32
    %c1_i32_118 = arith.constant 1 : i32
    %292 = arith.addi %291, %c1_i32_118 : i32
    %293 = arith.index_cast %292 : i32 to index
    %c0_119 = arith.constant 0 : index
    %c0_120 = arith.constant 0 : index
    %294 = vector.load %arg1[%293, %c0_119, %c0_120] : memref<8x16x4xf32, #tpu.memory_space<vmem>>, vector<1x16x4xf32>
    %295 = vector.shape_cast %294 : vector<1x16x4xf32> to vector<16x4xf32>
    %c5_i32_121 = arith.constant 5 : i32
    %296 = arith.addi %0, %c5_i32_121 : i32
    %c2_i32_122 = arith.constant 2 : i32
    %297 = arith.addi %296, %c2_i32_122 : i32
    %298 = arith.index_cast %297 : i32 to index
    %c0_123 = arith.constant 0 : index
    %c0_124 = arith.constant 0 : index
    %299 = vector.load %arg1[%298, %c0_123, %c0_124] : memref<8x16x4xf32, #tpu.memory_space<vmem>>, vector<1x16x4xf32>
    %300 = vector.shape_cast %299 : vector<1x16x4xf32> to vector<16x4xf32>
    %301 = tpu.concatenate %290, %295, %300 in 1 : vector<16x4xf32>, vector<16x4xf32>, vector<16x4xf32> -> vector<16x12xf32>
    %cst_125 = arith.constant dense<0.000000e+00> : vector<16x48xf32>
    %302 = tpu.matmul %301, %2, %cst_125 {dimension_numbers = #tpu.dot_dimension_numbers<[1], [0], [0], [1], [0, 0, 1, 1], [], []>} : vector<16x12xf32>, vector<12x48xf32>, vector<16x48xf32> -> vector<16x48xf32>
    %303 = vector.broadcast %4 : vector<1x48xf32> to vector<16x48xf32>
    %304 = arith.addf %302, %303 : vector<16x48xf32>
    %305 = vector.extract_strided_slice %304 {offsets = [0, 0], sizes = [16, 16], strides = [1, 1]} : vector<16x48xf32> to vector<16x16xf32>
    %306 = vector.extract_strided_slice %304 {offsets = [0, 16], sizes = [16, 16], strides = [1, 1]} : vector<16x48xf32> to vector<16x16xf32>
    %307 = arith.negf %306 : vector<16x16xf32>
    %308 = math.exp %307 : vector<16x16xf32>
    %cst_126 = arith.constant 1.000000e+00 : f32
    %309 = vector.broadcast %cst_126 : f32 to vector<16x16xf32>
    %310 = arith.addf %309, %308 : vector<16x16xf32>
    %311 = arith.divf %309, %310 : vector<16x16xf32>
    %312 = vector.extract_strided_slice %304 {offsets = [0, 32], sizes = [16, 16], strides = [1, 1]} : vector<16x48xf32> to vector<16x16xf32>
    %313 = arith.mulf %305, %311 : vector<16x16xf32>
    %314 = arith.addf %313, %312 : vector<16x16xf32>
    %cst_127 = arith.constant 0.000000e+00 : f32
    %315 = vector.broadcast %cst_127 : f32 to vector<16x16xf32>
    %316 = arith.maximumf %314, %315 : vector<16x16xf32>
    %317 = vector.extract_strided_slice %316 {offsets = [0, 0], sizes = [8, 16], strides = [1, 1]} : vector<16x16xf32> to vector<8x16xf32>
    %318 = vector.extract_strided_slice %316 {offsets = [8, 0], sizes = [8, 16], strides = [1, 1]} : vector<16x16xf32> to vector<8x16xf32>
    %319 = tpu.concatenate %317, %318 in 1 : vector<8x16xf32>, vector<8x16xf32> -> vector<8x32xf32>
    %cst_128 = arith.constant dense<0.000000e+00> : vector<8x32xf32>
    %320 = tpu.matmul %1, %319, %cst_128 {dimension_numbers = #tpu.dot_dimension_numbers<[1], [0], [0], [1], [0, 0, 1, 1], [], []>} : vector<8x8xf32>, vector<8x32xf32>, vector<8x32xf32> -> vector<8x32xf32>
    %cst_129 = arith.constant dense<0.000000e+00> : vector<8x32xf32>
    %321 = tpu.matmul %1, %320, %cst_129 {dimension_numbers = #tpu.dot_dimension_numbers<[1], [0], [0], [1], [0, 0, 1, 1], [], []>} : vector<8x8xf32>, vector<8x32xf32>, vector<8x32xf32> -> vector<8x32xf32>
    %cst_130 = arith.constant 2.000000e+00 : f32
    %322 = vector.broadcast %cst_130 : f32 to vector<8x32xf32>
    %323 = arith.mulf %322, %321 : vector<8x32xf32>
    %324 = arith.subf %323, %319 : vector<8x32xf32>
    %325 = vector.extract_strided_slice %319 {offsets = [0, 0], sizes = [8, 16], strides = [1, 1]} : vector<8x32xf32> to vector<8x16xf32>
    %326 = vector.extract_strided_slice %320 {offsets = [0, 0], sizes = [8, 16], strides = [1, 1]} : vector<8x32xf32> to vector<8x16xf32>
    %327 = vector.extract_strided_slice %324 {offsets = [0, 0], sizes = [8, 16], strides = [1, 1]} : vector<8x32xf32> to vector<8x16xf32>
    %328 = tpu.concatenate %325, %326, %327 in 1 : vector<8x16xf32>, vector<8x16xf32>, vector<8x16xf32> -> vector<8x48xf32>
    %329 = vector.extract_strided_slice %319 {offsets = [0, 16], sizes = [8, 16], strides = [1, 1]} : vector<8x32xf32> to vector<8x16xf32>
    %330 = vector.extract_strided_slice %320 {offsets = [0, 16], sizes = [8, 16], strides = [1, 1]} : vector<8x32xf32> to vector<8x16xf32>
    %331 = vector.extract_strided_slice %324 {offsets = [0, 16], sizes = [8, 16], strides = [1, 1]} : vector<8x32xf32> to vector<8x16xf32>
    %332 = tpu.concatenate %329, %330, %331 in 1 : vector<8x16xf32>, vector<8x16xf32>, vector<8x16xf32> -> vector<8x48xf32>
    %333 = tpu.concatenate %328, %332 in 0 : vector<8x48xf32>, vector<8x48xf32> -> vector<16x48xf32>
    %cst_131 = arith.constant dense<0.000000e+00> : vector<16x16xf32>
    %334 = tpu.matmul %333, %3, %cst_131 {dimension_numbers = #tpu.dot_dimension_numbers<[1], [0], [0], [1], [0, 0, 1, 1], [], []>} : vector<16x48xf32>, vector<48x16xf32>, vector<16x16xf32> -> vector<16x16xf32>
    %335 = vector.broadcast %5 : vector<1x16xf32> to vector<16x16xf32>
    %336 = arith.addf %334, %335 : vector<16x16xf32>
    %cst_132 = arith.constant 0.000000e+00 : f32
    %337 = vector.broadcast %cst_132 : f32 to vector<16x16xf32>
    %338 = arith.maximumf %336, %337 : vector<16x16xf32>
    %c5 = arith.constant 5 : index
    %c0_133 = arith.constant 0 : index
    %c0_134 = arith.constant 0 : index
    %339 = vector.load %arg7[%c5, %c0_133, %c0_134] : memref<6x16x16xf32, #tpu.memory_space<vmem>>, vector<1x16x16xf32>
    %340 = vector.shape_cast %339 : vector<1x16x16xf32> to vector<16x16xf32>
    %341 = vector.shape_cast %338 : vector<16x16xf32> to vector<1x16x16xf32>
    tpu.vector_store %arg7[%c5, %c0_133, %c0_134], %341 {strides = array<i32>} : memref<6x16x16xf32, #tpu.memory_space<vmem>>, vector<1x16x16xf32>,
    return
  }
  func.func @transform_0(%arg0: i32) -> (i32, i32, i32) {
    %c0_i32 = arith.constant 0 : i32
    %c0_i32_0 = arith.constant 0 : i32
    %c0_i32_1 = arith.constant 0 : i32
    %c0_i32_2 = arith.constant 0 : i32
    return %c0_i32, %c0_i32_0, %c0_i32_1 : i32, i32, i32
  }
  func.func @transform_1(%arg0: i32) -> (i32, i32) {
    %c0_i32 = arith.constant 0 : i32
    %c0_i32_0 = arith.constant 0 : i32
    %c0_i32_1 = arith.constant 0 : i32
    return %c0_i32, %c0_i32_0 : i32, i32
  }
  func.func @transform_2(%arg0: i32) -> (i32, i32) {
    %c0_i32 = arith.constant 0 : i32
    %c0_i32_0 = arith.constant 0 : i32
    %c0_i32_1 = arith.constant 0 : i32
    return %c0_i32, %c0_i32_0 : i32, i32
  }
  func.func @transform_3(%arg0: i32) -> (i32, i32) {
    %c0_i32 = arith.constant 0 : i32
    %c0_i32_0 = arith.constant 0 : i32
    %c0_i32_1 = arith.constant 0 : i32
    return %c0_i32, %c0_i32_0 : i32, i32
  }
  func.func @transform_4(%arg0: i32) -> (i32, i32) {
    %c0_i32 = arith.constant 0 : i32
    %c0_i32_0 = arith.constant 0 : i32
    %c0_i32_1 = arith.constant 0 : i32
    return %c0_i32, %c0_i32_0 : i32, i32
  }
  func.func @transform_5(%arg0: i32) -> (i32, i32) {
    %c0_i32 = arith.constant 0 : i32
    %c0_i32_0 = arith.constant 0 : i32
    %c0_i32_1 = arith.constant 0 : i32
    return %c0_i32, %c0_i32_0 : i32, i32
  }
  func.func @transform_6(%arg0: i32) -> (i32, i32, i32) {
    %c0_i32 = arith.constant 0 : i32
    %c0_i32_0 = arith.constant 0 : i32
    %c0_i32_1 = arith.constant 0 : i32
    return %arg0, %c0_i32, %c0_i32_0 : i32, i32, i32
  }
}

</mosaic_0001>

<bundles_post_ra>
// kernel: tpu_custom_call.1
= control target key start
LH: loop header
LB: loop body
LE: loop exit
PB: predicated region body
PF: predicated region fallthrough
CT: control target
= control target key end

     0   :  { %11 = vsyncpa [#allocation3], 0  ;;  %s3830_s0 = inlined_call_operand.hbm [shape: f32[8,16,4], index: 0, kind: input, shape index: {}]   ;;  %s3831_s1 = inlined_call_operand.hbm [shape: f32[12,48], index: 1, kind: input, shape index: {}]   ;;  %s3832_s2 = inlined_call_operand.hbm [shape: f32[1,48], index: 2, kind: input, shape index: {}]   ;;  %s3833_s3 = inlined_call_operand.hbm [shape: f32[8,8], index: 3, kind: input, shape index: {}]   ;;  %s3834_s4 = inlined_call_operand.hbm [shape: f32[48,16], index: 4, kind: input, shape index: {}]   ;;  %s3835_s5 = inlined_call_operand.hbm [shape: f32[1,16], index: 5, kind: input, shape index: {}]   ;;  %s3836_s6 = inlined_call_operand.hbm [shape: f32[6,16,16], index: 6, kind: output, shape index: {}]  }
   0x1   :  { %12 = vsyncpa [#allocation6], 0 }
   0x2   :  { %13 = vsyncpa [#allocation9], 0 }
   0x3   :  { %14 = vsyncpa [#allocation12], 0 }
   0x4   :  { %15 = vsyncpa [#allocation4], 0  ;;  %s3225_s21 = smov [#allocation5]   ;;  %s3226_s23 = smov [#allocation8]  }
   0x5   :  { %s33_s22 = sshll.u32 %s3225_s21, 4  ;;  %s56_s24 = sshll.u32 %s3226_s23, 4  ;;  %s34_s22 = int_to_ptr.vmem [resolvable:$true] %s33_s22  ;;  %s57_s24 = int_to_ptr.vmem [resolvable:$true] %s56_s24 }
   0x6   :  { %s3061_s27 = scalar_lea.hbm %s3831_s1, 256 }
   0x7   :  { %p3062_p0 = scmp.ne.s32.totalorder %s3831_s1, %s3061_s27  ;;  %p3065_p1 = scmp.lt.u32.totalorder %s3061_s27, %s3831_s1 }
   0x9   :  { %p3067_p2 = pnand %p3065_p1, %p3062_p0 }
   0xb   :  { %3070 = shalt.err (!%p3067_p2)
}
   0xc   :  { %s3071_s8 = scalar_lea.vmem %s34_s22, 256  ;;  %p3076_p4 = scmp.lt.s32.totalorder %s34_s22, %s34_s22 }
   0xd   :  { %p3072_p3 = scmp.ne.s32.totalorder %s34_s22, %s3071_s8  ;;  %p3077_p5 = scmp.lt.s32.totalorder %s3071_s8, %s3071_s8 }
   0xf   :  { %p3078_p6 = por %p3077_p5, %p3076_p4 }
  0x11   :  { %p3079_p7 = pnand %p3078_p6, %p3072_p3 }
  0x13   :  { %3082 = shalt.err (!%p3079_p7)
}
  0x14   :  { %s3227_s9 = smov 128   ;;  %s3228_s10 = smov 8  }
  0x15   :  { %39 = dma.hbm_to_vmem [thread:$0]  %s3831_s1, 256, %s34_s22, [#allocation6], %s3227_s9, %s3227_s9, %s3228_s10  }
  0x16   :  { %s3083_s15 = scalar_lea.hbm %s3833_s3, 128 }
  0x17   :  { %p3084_p8 = scmp.ne.s32.totalorder %s3833_s3, %s3083_s15  ;;  %p3087_p9 = scmp.lt.u32.totalorder %s3083_s15, %s3833_s3 }
  0x19   :  { %p3089_p10 = pnand %p3087_p9, %p3084_p8 }
  0x1b   :  { %3092 = shalt.err (!%p3089_p10)
}
  0x1c   :  { %s3093_s20 = scalar_lea.vmem %s57_s24, 128  ;;  %p3098_p12 = scmp.lt.s32.totalorder %s57_s24, %s57_s24 }
  0x1d   :  { %p3094_p11 = scmp.ne.s32.totalorder %s57_s24, %s3093_s20  ;;  %p3099_p13 = scmp.lt.s32.totalorder %s3093_s20, %s3093_s20 }
  0x1f   :  { %p3100_p0 = por %p3099_p13, %p3098_p12 }
  0x21   :  { %p3101_p1 = pnand %p3100_p0, %p3094_p11 }
  0x23   :  { %3104 = shalt.err (!%p3101_p1)
}
  0x24   :  { %59 = dma.hbm_to_vmem [thread:$0]  %s3833_s3, 128, %s57_s24, [#allocation9]  }
  0x25   :  { %s3229_s22 = smov [#allocation2]   ;;  %s3230_s25 = smov [#allocation7]  }
  0x26   :  { %s21_s23 = sshll.u32 %s3229_s22, 4  ;;  %s46_s26 = sshll.u32 %s3230_s25, 4  ;;  %s22_s23 = int_to_ptr.vmem [resolvable:$true] %s21_s23  ;;  %s47_s26 = int_to_ptr.vmem [resolvable:$true] %s46_s26 }
  0x27   :  { %s3105_s29 = scalar_lea.hbm %s3830_s0, 2048 }
  0x28   :  { %p3106_p2 = scmp.ne.s32.totalorder %s3830_s0, %s3105_s29  ;;  %p3109_p3 = scmp.lt.u32.totalorder %s3105_s29, %s3830_s0 }
  0x2a   :  { %p3111_p4 = pnand %p3109_p3, %p3106_p2 }
  0x2c   :  { %3114 = shalt.err (!%p3111_p4)
}
  0x2d   :  { %s3115_s3 = scalar_lea.vmem %s22_s23, 2048  ;;  %p3120_p6 = scmp.lt.s32.totalorder %s22_s23, %s22_s23 }
  0x2e   :  { %p3116_p5 = scmp.ne.s32.totalorder %s22_s23, %s3115_s3  ;;  %p3121_p7 = scmp.lt.s32.totalorder %s3115_s3, %s3115_s3 }
  0x30   :  { %p3122_p8 = por %p3121_p7, %p3120_p6 }
  0x32   :  { %p3123_p9 = pnand %p3122_p8, %p3116_p5 }
  0x34   :  { %3126 = shalt.err (!%p3123_p9)
}
  0x35   :  { %27 = dma.hbm_to_vmem [thread:$0]  %s3830_s0, 2048, %s22_s23, [#allocation3], %s3227_s9, %s3227_s9, %s3228_s10  }
  0x36   :  { %s3127_s15 = scalar_lea.hbm %s3832_s2, 16 }
  0x37   :  { %p3128_p10 = scmp.ne.s32.totalorder %s3832_s2, %s3127_s15  ;;  %p3131_p11 = scmp.lt.u32.totalorder %s3127_s15, %s3832_s2 }
  0x39   :  { %p3133_p12 = pnand %p3131_p11, %p3128_p10 }
  0x3b   :  { %3136 = shalt.err (!%p3133_p12)
}
  0x3c   :  { %s3137_s20 = scalar_lea.vmem %s47_s26, 16  ;;  %s3141_s1 = scalar_lea.vmem %s47_s26, 32 }
  0x3d   :  { %p3138_p13 = scmp.ne.s32.totalorder %s47_s26, %s3137_s20  ;;  %p3142_p0 = scmp.lt.s32.totalorder %s47_s26, %s47_s26 }
  0x3e   :  { %p3143_p1 = scmp.lt.s32.totalorder %s3141_s1, %s3137_s20 }
  0x40   :  { %p3144_p2 = por %p3143_p1, %p3142_p0 }
  0x42   :  { %p3145_p3 = pnand %p3144_p2, %p3138_p13 }
  0x44   :  { %3148 = shalt.err (!%p3145_p3)
}
  0x45   :  { %49 = dma.hbm_to_vmem [thread:$0]  %s3832_s2, 16, %s47_s26, [#allocation6]  }
  0x46   :  { %s3231_s22 = smov [#allocation10]   ;;  %s3232_s25 = smov [#allocation11]  }
  0x47   :  { %s65_s23 = sshll.u32 %s3231_s22, 4  ;;  %s78_s27 = sshll.u32 %s3232_s25, 4  ;;  %s66_s23 = int_to_ptr.vmem [resolvable:$true] %s65_s23  ;;  %s79_s27 = int_to_ptr.vmem [resolvable:$true] %s78_s27 }
  0x48   :  { %s3149_s30 = scalar_lea.hbm %s3834_s4, 768 }
  0x49   :  { %p3150_p4 = scmp.ne.s32.totalorder %s3834_s4, %s3149_s30  ;;  %p3153_p5 = scmp.lt.u32.totalorder %s3149_s30, %s3834_s4 }
  0x4b   :  { %p3155_p6 = pnand %p3153_p5, %p3150_p4 }
  0x4d   :  { %3158 = shalt.err (!%p3155_p6)
}
  0x4e   :  { %s3159_s2 = scalar_lea.vmem %s66_s23, 768  ;;  %p3164_p8 = scmp.lt.s32.totalorder %s66_s23, %s66_s23 }
  0x4f   :  { %p3160_p7 = scmp.ne.s32.totalorder %s66_s23, %s3159_s2  ;;  %p3165_p9 = scmp.lt.s32.totalorder %s3159_s2, %s3159_s2 }
  0x51   :  { %p3166_p10 = por %p3165_p9, %p3164_p8 }
  0x53   :  { %p3167_p11 = pnand %p3166_p10, %p3160_p7 }
  0x55   :  { %3170 = shalt.err (!%p3167_p11)
}
  0x56   :  { %71 = dma.hbm_to_vmem [thread:$0]  %s3834_s4, 768, %s66_s23, [#allocation9], %s3227_s9, %s3227_s9, %s3228_s10  }
  0x57   :  { %s3171_s14 = scalar_lea.hbm %s3835_s5, 16 }
  0x58   :  { %p3172_p12 = scmp.ne.s32.totalorder %s3835_s5, %s3171_s14  ;;  %p3175_p13 = scmp.lt.u32.totalorder %s3171_s14, %s3835_s5 }
  0x5a   :  { %p3177_p0 = pnand %p3175_p13, %p3172_p12 }
  0x5c   :  { %3180 = shalt.err (!%p3177_p0)
}
  0x5d   :  { %s3181_s19 = scalar_lea.vmem %s79_s27, 16  ;;  %s3185_s20 = scalar_lea.vmem %s79_s27, 32 }
  0x5e   :  { %p3182_p1 = scmp.ne.s32.totalorder %s79_s27, %s3181_s19  ;;  %p3186_p2 = scmp.lt.s32.totalorder %s79_s27, %s79_s27 }
  0x5f   :  { %p3187_p3 = scmp.lt.s32.totalorder %s3185_s20, %s3181_s19 }
  0x61   :  { %p3188_p4 = por %p3187_p3, %p3186_p2 }
  0x63   :  { %p3189_p5 = pnand %p3188_p4, %p3182_p1 }
  0x65   :  { %3192 = shalt.err (!%p3189_p5)
}
  0x66   :  { %81 = dma.hbm_to_vmem [thread:$0]  %s3835_s5, 16, %s79_s27, [#allocation12]  }
  0x67   :  { %3215 = dma.done.wait [#allocation3], 2048  }
  0x68   :  { %3216 = vsyncadd [#allocation3], 4294965248 }
  0x69   :  { %3217 = dma.done.wait [#allocation6], 272  }
  0x6a   :  { %3218 = vsyncadd [#allocation6], 4294967024 }
  0x6b   :  { %3219 = dma.done.wait [#allocation9], 896  }
  0x6c   :  { %3220 = vsyncadd [#allocation9], 4294966400 }
  0x6d   :  { %3221 = dma.done.wait [#allocation12], 16  }
  0x6e   :  { %3222 = vsyncadd [#allocation12], 4294967280  ;;  %v3358_v0 = vld [vmem:[#allocation2 + $0x10] sm:$0xff]  ;;  %v3360_v1 = vld [vmem:[#allocation2 + $0x20] sm:$0xff]  ;;  %vm161_vm0 = vcmask 1043456   ;;  %s3233_s0 = smov 4  }
  0x6f   :  { %128 = vrot.lane.b32.xlu0 %v3358_v0, %s3233_s0  ;;  %136 = vrot.lane.b32.xlu1 %v3360_v1, %s3228_s10  ;;  %v102_v2 = vld [vmem:[#allocation5] sm:$0xff]  ;;  %v3366_v3 = vld [vmem:[#allocation2 + $0x18] sm:$0xff]  ;;  %v3368_v4 = vld [vmem:[#allocation2 + $0x28] sm:$0xff]  ;;  %vm3234_vm1 = vmmov 1   ;;  %vm142_vm3 = vcmask 31744   ;;  %vm145_vm4 = vcmask 64512  }
  0x70   :  { %v103_v5 = vld [vmem:[#allocation5 + $0x8] sm:$0xf]  ;;  %vm3372_vm2 = vmpackc.low %vm161_vm0, %vm3234_vm1  ;;  %v114_v8 = vld [vmem:[#allocation2] sm:$0xff]  ;;  %vm154_vm5 = vcmask 97280   ;;  %s3235_s5 = smov 96   ;;  %s3236_s21 = smov 112  }
  0x71   :  { %v3370_v6 = vpack.c.bf16 %v103_v5, %v102_v2  ;;  %v115_v13 = vld [vmem:[#allocation2 + $0x8] sm:$0xff]  ;;  %v3392_v18 = vld [vmem:[#allocation7] ss:$0 sm:$0xff]  ;;  %v3237_v31 = vmov 0.0   ;;  %vm3238_vm6 = vmmov 0   ;;  %s3239_s22 = smov 16  }
  0x72   :  { %v3405_v32 = vld [vmem:[#allocation2 + $0x30] sm:$0xff]  ;;  %v3412_v38 = vld [vmem:[#allocation2 + $0x38] sm:$0xff]  ;;  %vm278_vm7 = vcmask 130048   ;;  %s3240_s23 = smov 32   ;;  %vm434_vm8 = vcmask 261120   ;;  %vm451_vm9 = vcmask 392192  }
  0x73   :  { %130 = vrot.lane.b32.xlu0 %v3366_v3, %s3233_s0  ;;  %138 = vrot.lane.b32.xlu1 %v3368_v4, %s3228_s10  ;;  %v3416_v45 = vld [vmem:[#allocation8] sm:$0xff]  ;;  %s3241_s25 = smov [#allocation13]  }
  0x74   :  { %2890 = vmatprep.subr.msk.bf16.mxu1 %vm3372_vm2, %v3370_v6  ;;  %s2522_s27 = sshll.u32 %s3241_s25, 4  ;;  %s2523_s27 = int_to_ptr.vmem [resolvable:$true] %s2522_s27 }
  0x75   :  { %2893 = vmatpush3.bf16.msk.msra.mxu1 %vm3372_vm2, %v3370_v6  ;;  %s3193_s28 = scalar_lea.vmem %s2523_s27, 1536  ;;  %p3198_p7 = scmp.lt.s32.totalorder %s2523_s27, %s2523_s27 }
  0x76   :  { %2703 = vmatprep.subr.mxu1 %v3237_v31  ;;  %p3194_p6 = scmp.ne.s32.totalorder %s2523_s27, %s3193_s28  ;;  %p3199_p8 = scmp.lt.s32.totalorder %s3193_s28, %s3193_s28 }
  0x78   :  { %p3200_p9 = por %p3199_p8, %p3198_p7 }
  0x7a   :  { %p3201_p10 = pnand %p3200_p9, %p3194_p6 }
  0xe1   :  { %v129_v9 = vpop.permute.xlu0 %128  ;;  %v137_v10 = vpop.permute.xlu1 %136 }
  0xe2   :  { %v143_v11 = vsel %vm142_vm3, %v114_v8, %v129_v9 }
  0xe3   :  { %v146_v12 = vsel %vm145_vm4, %v143_v11, %v137_v10  ;;  %v3459_v11 = vld [vmem:[#allocation2 + $0x40] sm:$0xff] }
  0xe4   :  { %2700 = vmatprep.mubr.msk.f32.mxu1 %vm154_vm5, %v146_v12 }
  0xe5   :  { %v131_v14 = vpop.permute.xlu0 %130  ;;  %v139_v15 = vpop.permute.xlu1 %138 }
  0xe6   :  { %v144_v16 = vsel %vm142_vm3, %v115_v13, %v131_v14 }
  0xe7   :  { %v147_v17 = vsel %vm145_vm4, %v144_v16, %v139_v15 }
  0xe8   :  { %2701 = vmatmul.mubr.msk.f32.vlgmr.msra.gmra.mrb[0].mxu1 %vm154_vm5, %v147_v17  ;;  %v3466_v17 = vld [vmem:[#allocation2 + $0x48] sm:$0xff] }
  0xe9   :  { %2705 = vmatprep.mubr.msk.f32.mxu1 %vm3238_vm6, %v3237_v31 }
 0x1bb   :  { %v2702_v19 = vpop.f32.mrb[0].mxu1 }
 0x1bc   :  { %v237_v20 = vadd.f32 %v2702_v19, %v3392_v18  ;;  %v231_v21 = vpop.f32.mrb[1].mxu1 }
 0x1bd   :  { %v232_v22 = vadd.f32 %v3392_v18, %v231_v21 }
 0x1be   :  { %v2549_v23 = vmul.f32 -1.442695, %v237_v20  ;;  %266 = vrot.lane.b32.xlu1 %v237_v20, %s3235_s5 }
 0x1bf   :  { %v2548_v24 = vmul.f32 -1.442695, %v232_v22 }
 0x1c0   :  { %3013 = vpow2.f32 %v2549_v23 }
 0x1c1   :  { %3015 = vpow2.f32 %v2548_v24 }
 0x1c2   :  { %264 = vrot.lane.b32.xlu1 %v232_v22, %s3235_s5 }
 0x1c6   :  { %548 = vrot.lane.b32.xlu1 %v3360_v1, %s3233_s0 }
 0x1ca   :  { %v3014_v25 = vpop.eup %3013  ;;  %556 = vrot.lane.b32.xlu1 %v3405_v32, %s3228_s10 }
 0x1cb   :  { %v3016_v26 = vpop.eup %3015  ;;  %v247_v27 = vadd.f32 1.0, %v3014_v25 }
 0x1cc   :  { %v246_v28 = vadd.f32 1.0, %v3016_v26 }
 0x1cd   :  { %3017 = vrcp.f32 %v247_v27 }
 0x1ce   :  { %3019 = vrcp.f32 %v246_v28 }
 0x1d7   :  { %v3018_v29 = vpop.eup %3017 }
 0x1d8   :  { %256 = vrot.lane.b32.xlu0 %v3018_v29, %s3236_s21  ;;  %v3020_v30 = vpop.eup %3019 }
 0x1dc   :  { %254 = vrot.lane.b32.xlu0 %v3020_v30, %s3236_s21 }
 0x230   :  { %v267_v35 = vpop.permute.xlu1 %266 }
 0x234   :  { %v265_v41 = vpop.permute.xlu1 %264 }
 0x238   :  { %v549_v47 = vpop.permute.xlu1 %548 }
 0x239   :  { %v562_v49 = vsel %vm142_vm3, %v3358_v0, %v549_v47 }
 0x23c   :  { %v557_v50 = vpop.permute.xlu1 %556 }
 0x23d   :  { %v564_v51 = vsel %vm145_vm4, %v562_v49, %v557_v50 }
 0x24a   :  { %v257_v33 = vpop.permute.xlu0 %256 }
 0x24b   :  { %v261_v34 = vmul.f32 %v257_v33, %v237_v20 }
 0x24d   :  { %v271_v36 = vadd.f32 %v267_v35, %v261_v34 }
 0x24e   :  { %v255_v39 = vpop.permute.xlu0 %254 }
 0x24f   :  { %v273_v37 = vmax.f32 %v271_v36, 0.0  ;;  %v260_v40 = vmul.f32 %v255_v39, %v232_v22 }
 0x251   :  { %275 = vrot.lane.b32.xlu0 %v273_v37, %s3239_s22  ;;  %v270_v42 = vadd.f32 %v265_v41, %v260_v40 }
 0x253   :  { %v272_v43 = vmax.f32 %v270_v42, 0.0 }
 0x255   :  { %550 = vrot.lane.b32.xlu0 %v3368_v4, %s3233_s0 }
 0x259   :  { %558 = vrot.lane.b32.xlu0 %v3412_v38, %s3228_s10 }
 0x2c3   :  { %v276_v44 = vpop.permute.xlu0 %275 }
 0x2c4   :  { %v3419_v46 = vsel %vm278_vm7, %v272_v43, %v276_v44 }
 0x2c5   :  { %2704 = vmatpush3.msra.mxu1 %v3419_v46 }
 0x2c6   :  { %2706 = vmatmul.mubr.msk.f32.vlgmr.msra.gmra.mrb[2].mxu1 %vm145_vm4, %v3416_v45  ;;  %2708 = vmatprep.subr.mxu1 %v3237_v31 }
 0x2c7   :  { %2710 = vmatprep.mubr.msk.f32.mxu1 %vm3238_vm6, %v3237_v31  ;;  %v551_v48 = vpop.permute.xlu0 %550 }
 0x2c8   :  { %v563_v54 = vsel %vm142_vm3, %v3366_v3, %v551_v48 }
 0x2cb   :  { %v559_v55 = vpop.permute.xlu0 %558 }
 0x2cc   :  { %v565_v56 = vsel %vm145_vm4, %v563_v54, %v559_v55  ;;  %v3511_v54 = vld [vmem:[#allocation2 + $0x50] sm:$0xff] }
 0x399   :  { %v3430_v52 = vpop.f32.mrb[2].mxu1 }
 0x39a   :  { %v2707_v53 = vpop.f32.mrb[3].mxu1  ;;  %2709 = vmatpush3.msra.mxu1 %v3430_v52 }
 0x39b   :  { %2711 = vmatmul.mubr.msk.f32.vlgmr.msra.gmra.mrb[4].mxu1 %vm145_vm4, %v3416_v45  ;;  %2908 = vmatprep.subr.msk.bf16.mxu1 %vm3372_vm2, %v3370_v6 }
 0x39c   :  { %2911 = vmatpush3.bf16.msk.msra.mxu1 %vm3372_vm2, %v3370_v6  ;;  %2732 = vmatprep.mubr.msk.f32.mxu1 %vm154_vm5, %v564_v51 }
 0x39d   :  { %2735 = vmatprep.subr.mxu1 %v3237_v31 }
 0x39f   :  { %2733 = vmatmul.mubr.msk.f32.vlgmr.msra.gmra.mrb[6].mxu1 %vm154_vm5, %v565_v56 }
 0x3a0   :  { %2737 = vmatprep.mubr.msk.f32.mxu1 %vm3238_vm6, %v3237_v31 }
 0x46e   :  { %v3449_v57 = vpop.f32.mrb[4].mxu1 }
 0x46f   :  { %v2712_v58 = vpop.f32.mrb[5].mxu1 }
 0x472   :  { %v2734_v59 = vpop.f32.mrb[6].mxu1 }
 0x473   :  { %v644_v60 = vadd.f32 %v2734_v59, %v3392_v18  ;;  %v638_v61 = vpop.f32.mrb[7].mxu1 }
 0x474   :  { %v639_v62 = vadd.f32 %v3392_v18, %v638_v61  ;;  %v3518_v61 = vld [vmem:[#allocation2 + $0x58] sm:$0xff] }
 0x475   :  { %v2559_v63 = vmul.f32 -1.442695, %v644_v60  ;;  %673 = vrot.lane.b32.xlu0 %v644_v60, %s3235_s5 }
 0x476   :  { %v2558_v0 = vmul.f32 -1.442695, %v639_v62 }
 0x477   :  { %3021 = vpow2.f32 %v2559_v63 }
 0x478   :  { %3023 = vpow2.f32 %v2558_v0 }
 0x479   :  { %671 = vrot.lane.b32.xlu0 %v639_v62, %s3235_s5 }
 0x47d   :  { %944 = vrot.lane.b32.xlu0 %v3405_v32, %s3233_s0 }
 0x481   :  { %v3022_v2 = vpop.eup %3021  ;;  %952 = vrot.lane.b32.xlu0 %v3459_v11, %s3228_s10 }
 0x482   :  { %v3024_v3 = vpop.eup %3023  ;;  %v654_v5 = vadd.f32 1.0, %v3022_v2 }
 0x483   :  { %v653_v8 = vadd.f32 1.0, %v3024_v3 }
 0x484   :  { %3025 = vrcp.f32 %v654_v5 }
 0x485   :  { %3027 = vrcp.f32 %v653_v8 }
 0x48e   :  { %v3026_v9 = vpop.eup %3025 }
 0x48f   :  { %663 = vrot.lane.b32.xlu1 %v3026_v9, %s3236_s21  ;;  %v3028_v10 = vpop.eup %3027 }
 0x493   :  { %661 = vrot.lane.b32.xlu1 %v3028_v10, %s3236_s21 }
 0x4e7   :  { %v674_v14 = vpop.permute.xlu0 %673 }
 0x4eb   :  { %v672_v21 = vpop.permute.xlu0 %671 }
 0x4ef   :  { %v945_v26 = vpop.permute.xlu0 %944 }
 0x4f0   :  { %v958_v28 = vsel %vm142_vm3, %v3360_v1, %v945_v26 }
 0x4f3   :  { %v953_v29 = vpop.permute.xlu0 %952 }
 0x4f4   :  { %v960_v30 = vsel %vm145_vm4, %v958_v28, %v953_v29 }
 0x501   :  { %v664_v12 = vpop.permute.xlu1 %663 }
 0x502   :  { %v668_v13 = vmul.f32 %v664_v12, %v644_v60 }
 0x504   :  { %v678_v15 = vadd.f32 %v674_v14, %v668_v13 }
 0x505   :  { %v662_v19 = vpop.permute.xlu1 %661 }
 0x506   :  { %v680_v16 = vmax.f32 %v678_v15, 0.0  ;;  %v667_v20 = vmul.f32 %v662_v19, %v639_v62 }
 0x508   :  { %682 = vrot.lane.b32.xlu1 %v680_v16, %s3239_s22  ;;  %v677_v22 = vadd.f32 %v672_v21, %v667_v20 }
 0x50a   :  { %v679_v23 = vmax.f32 %v677_v22, 0.0 }
 0x50c   :  { %946 = vrot.lane.b32.xlu1 %v3412_v38, %s3233_s0 }
 0x510   :  { %954 = vrot.lane.b32.xlu1 %v3466_v17, %s3228_s10 }
 0x57a   :  { %v683_v24 = vpop.permute.xlu1 %682 }
 0x57b   :  { %v3471_v25 = vsel %vm278_vm7, %v679_v23, %v683_v24 }
 0x57c   :  { %2736 = vmatpush3.msra.mxu1 %v3471_v25 }
 0x57d   :  { %2738 = vmatmul.mubr.msk.f32.vlgmr.msra.gmra.mrb[8].mxu1 %vm145_vm4, %v3416_v45  ;;  %2740 = vmatprep.subr.mxu1 %v3237_v31 }
 0x57e   :  { %2742 = vmatprep.mubr.msk.f32.mxu1 %vm3238_vm6, %v3237_v31  ;;  %v947_v27 = vpop.permute.xlu1 %946 }
 0x57f   :  { %v959_v35 = vsel %vm142_vm3, %v3368_v4, %v947_v27 }
 0x582   :  { %v955_v36 = vpop.permute.xlu1 %954 }
 0x583   :  { %v961_v1 = vsel %vm145_vm4, %v959_v35, %v955_v36 }
 0x650   :  { %v3482_v33 = vpop.f32.mrb[8].mxu1 }
 0x651   :  { %v2739_v34 = vpop.f32.mrb[9].mxu1  ;;  %2741 = vmatpush3.msra.mxu1 %v3482_v33 }
 0x652   :  { %2743 = vmatmul.mubr.msk.f32.vlgmr.msra.gmra.mrb[10].mxu1 %vm145_vm4, %v3416_v45  ;;  %2926 = vmatprep.subr.msk.bf16.mxu1 %vm3372_vm2, %v3370_v6 }
 0x653   :  { %2929 = vmatpush3.bf16.msk.msra.mxu1 %vm3372_vm2, %v3370_v6  ;;  %2764 = vmatprep.mubr.msk.f32.mxu1 %vm154_vm5, %v960_v30 }
 0x654   :  { %2767 = vmatprep.subr.mxu1 %v3237_v31 }
 0x656   :  { %2765 = vmatmul.mubr.msk.f32.vlgmr.msra.gmra.mrb[12].mxu1 %vm154_vm5, %v961_v1 }
 0x657   :  { %2769 = vmatprep.mubr.msk.f32.mxu1 %vm3238_vm6, %v3237_v31 }
 0x725   :  { %v3501_v4 = vpop.f32.mrb[10].mxu1 }
 0x726   :  { %v2744_v37 = vpop.f32.mrb[11].mxu1 }
 0x727   :  { %v1732_v37 = vld [vmem:[#allocation2 + $0x60] sm:$0xff] }
 0x729   :  { %v2766_v39 = vpop.f32.mrb[12].mxu1 }
 0x72a   :  { %v1040_v40 = vadd.f32 %v2766_v39, %v3392_v18  ;;  %v1034_v41 = vpop.f32.mrb[13].mxu1 }
 0x72b   :  { %v1035_v42 = vadd.f32 %v3392_v18, %v1034_v41 }
 0x72c   :  { %v2568_v43 = vmul.f32 -1.442695, %v1040_v40  ;;  %1069 = vrot.lane.b32.xlu1 %v1040_v40, %s3235_s5 }
 0x72d   :  { %v2567_v44 = vmul.f32 -1.442695, %v1035_v42 }
 0x72e   :  { %3029 = vpow2.f32 %v2568_v43 }
 0x72f   :  { %3031 = vpow2.f32 %v2567_v44  ;;  %v1733_v44 = vld [vmem:[#allocation2 + $0x68] sm:$0xff] }
 0x730   :  { %1067 = vrot.lane.b32.xlu1 %v1035_v42, %s3235_s5 }
 0x734   :  { %1340 = vrot.lane.b32.xlu1 %v3459_v11, %s3233_s0 }
 0x738   :  { %v3030_v47 = vpop.eup %3029  ;;  %1348 = vrot.lane.b32.xlu1 %v3511_v54, %s3228_s10 }
 0x739   :  { %v3032_v48 = vpop.eup %3031  ;;  %v1050_v49 = vadd.f32 1.0, %v3030_v47 }
 0x73a   :  { %v1049_v50 = vadd.f32 1.0, %v3032_v48 }
 0x73b   :  { %3033 = vrcp.f32 %v1050_v49 }
 0x73c   :  { %3035 = vrcp.f32 %v1049_v50 }
 0x745   :  { %v3034_v51 = vpop.eup %3033 }
 0x746   :  { %1059 = vrot.lane.b32.xlu0 %v3034_v51, %s3236_s21  ;;  %v3036_v53 = vpop.eup %3035 }
 0x74a   :  { %1057 = vrot.lane.b32.xlu0 %v3036_v53, %s3236_s21 }
 0x79e   :  { %v1070_v58 = vpop.permute.xlu1 %1069 }
 0x7a2   :  { %v1068_v0 = vpop.permute.xlu1 %1067 }
 0x7a6   :  { %v1341_v9 = vpop.permute.xlu1 %1340 }
 0x7a7   :  { %v1354_v12 = vsel %vm142_vm3, %v3405_v32, %v1341_v9 }
 0x7aa   :  { %v1349_v13 = vpop.permute.xlu1 %1348 }
 0x7ab   :  { %v1356_v14 = vsel %vm145_vm4, %v1354_v12, %v1349_v13 }
 0x7b8   :  { %v1060_v55 = vpop.permute.xlu0 %1059 }
 0x7b9   :  { %v1064_v56 = vmul.f32 %v1060_v55, %v1040_v40 }
 0x7bb   :  { %v1074_v59 = vadd.f32 %v1070_v58, %v1064_v56 }
 0x7bc   :  { %v1058_v62 = vpop.permute.xlu0 %1057 }
 0x7bd   :  { %v1076_v60 = vmax.f32 %v1074_v59, 0.0  ;;  %v1063_v63 = vmul.f32 %v1058_v62, %v1035_v42 }
 0x7bf   :  { %1078 = vrot.lane.b32.xlu0 %v1076_v60, %s3239_s22  ;;  %v1073_v2 = vadd.f32 %v1068_v0, %v1063_v63 }
 0x7c1   :  { %v1075_v3 = vmax.f32 %v1073_v2, 0.0 }
 0x7c3   :  { %1342 = vrot.lane.b32.xlu0 %v3466_v17, %s3233_s0 }
 0x7c7   :  { %1350 = vrot.lane.b32.xlu0 %v3518_v61, %s3228_s10 }
 0x831   :  { %v1079_v5 = vpop.permute.xlu0 %1078 }
 0x832   :  { %v3523_v8 = vsel %vm278_vm7, %v1075_v3, %v1079_v5 }
 0x833   :  { %2768 = vmatpush3.msra.mxu1 %v3523_v8 }
 0x834   :  { %2770 = vmatmul.mubr.msk.f32.vlgmr.msra.gmra.mrb[14].mxu1 %vm145_vm4, %v3416_v45  ;;  %2772 = vmatprep.subr.mxu1 %v3237_v31 }
 0x835   :  { %2774 = vmatprep.mubr.msk.f32.mxu1 %vm3238_vm6, %v3237_v31  ;;  %v1343_v10 = vpop.permute.xlu0 %1342 }
 0x836   :  { %v1355_v19 = vsel %vm142_vm3, %v3412_v38, %v1343_v10 }
 0x839   :  { %v1351_v20 = vpop.permute.xlu0 %1350 }
 0x83a   :  { %v1357_v32 = vsel %vm145_vm4, %v1355_v19, %v1351_v20 }
 0x907   :  { %v3534_v15 = vpop.f32.mrb[14].mxu1 }
 0x908   :  { %v2771_v16 = vpop.f32.mrb[15].mxu1  ;;  %2773 = vmatpush3.msra.mxu1 %v3534_v15 }
 0x909   :  { %2775 = vmatmul.mubr.msk.f32.vlgmr.msra.gmra.mrb[16].mxu1 %vm145_vm4, %v3416_v45  ;;  %2944 = vmatprep.subr.msk.bf16.mxu1 %vm3372_vm2, %v3370_v6 }
 0x90a   :  { %2947 = vmatpush3.bf16.msk.msra.mxu1 %vm3372_vm2, %v3370_v6  ;;  %2796 = vmatprep.mubr.msk.f32.mxu1 %vm154_vm5, %v1356_v14 }
 0x90b   :  { %2799 = vmatprep.subr.mxu1 %v3237_v31 }
 0x90d   :  { %2797 = vmatmul.mubr.msk.f32.vlgmr.msra.gmra.mrb[18].mxu1 %vm154_vm5, %v1357_v32 }
 0x90e   :  { %2801 = vmatprep.mubr.msk.f32.mxu1 %vm3238_vm6, %v3237_v31 }
 0x9dc   :  { %v3553_v38 = vpop.f32.mrb[16].mxu1 }
 0x9dd   :  { %v2776_v21 = vpop.f32.mrb[17].mxu1 }
 0x9e0   :  { %v2798_v22 = vpop.f32.mrb[18].mxu1 }
 0x9e1   :  { %v1436_v23 = vadd.f32 %v2798_v22, %v3392_v18  ;;  %v1430_v24 = vpop.f32.mrb[19].mxu1 }
 0x9e2   :  { %v1431_v26 = vadd.f32 %v3392_v18, %v1430_v24  ;;  %v2128_v24 = vld [vmem:[#allocation2 + $0x70] sm:$0xff] }
 0x9e3   :  { %v2577_v27 = vmul.f32 -1.442695, %v1436_v23  ;;  %1465 = vrot.lane.b32.xlu0 %v1436_v23, %s3235_s5 }
 0x9e4   :  { %v2576_v28 = vmul.f32 -1.442695, %v1431_v26 }
 0x9e5   :  { %3037 = vpow2.f32 %v2577_v27 }
 0x9e6   :  { %3039 = vpow2.f32 %v2576_v28 }
 0x9e7   :  { %1463 = vrot.lane.b32.xlu0 %v1431_v26, %s3235_s5 }
 0x9eb   :  { %1736 = vrot.lane.b32.xlu0 %v3511_v54, %s3233_s0 }
 0x9ef   :  { %v3038_v29 = vpop.eup %3037  ;;  %1744 = vrot.lane.b32.xlu0 %v1732_v37, %s3228_s10 }
 0x9f0   :  { %v3040_v30 = vpop.eup %3039  ;;  %v1446_v34 = vadd.f32 1.0, %v3038_v29 }
 0x9f1   :  { %v1445_v35 = vadd.f32 1.0, %v3040_v30 }
 0x9f2   :  { %3041 = vrcp.f32 %v1446_v34  ;;  %v2129_v34 = vld [vmem:[#allocation2 + $0x78] sm:$0xff] }
 0x9f3   :  { %3043 = vrcp.f32 %v1445_v35 }
 0x9fc   :  { %v3042_v36 = vpop.eup %3041 }
 0x9fd   :  { %1455 = vrot.lane.b32.xlu1 %v3042_v36, %s3236_s21  ;;  %v3044_v1 = vpop.eup %3043 }
 0xa01   :  { %1453 = vrot.lane.b32.xlu1 %v3044_v1, %s3236_s21 }
 0xa55   :  { %v1466_v41 = vpop.permute.xlu0 %1465 }
 0xa59   :  { %v1464_v49 = vpop.permute.xlu0 %1463 }
 0xa5d   :  { %v1737_v56 = vpop.permute.xlu0 %1736 }
 0xa5e   :  { %v1750_v59 = vsel %vm142_vm3, %v3459_v11, %v1737_v56 }
 0xa61   :  { %v1745_v60 = vpop.permute.xlu0 %1744 }
 0xa62   :  { %v1752_v62 = vsel %vm145_vm4, %v1750_v59, %v1745_v60 }
 0xa6f   :  { %v1456_v39 = vpop.permute.xlu1 %1455 }
 0xa70   :  { %v1460_v40 = vmul.f32 %v1456_v39, %v1436_v23 }
 0xa72   :  { %v1470_v42 = vadd.f32 %v1466_v41, %v1460_v40 }
 0xa73   :  { %v1454_v47 = vpop.permute.xlu1 %1453 }
 0xa74   :  { %v1472_v43 = vmax.f32 %v1470_v42, 0.0  ;;  %v1459_v48 = vmul.f32 %v1454_v47, %v1431_v26 }
 0xa76   :  { %1474 = vrot.lane.b32.xlu1 %v1472_v43, %s3239_s22  ;;  %v1469_v50 = vadd.f32 %v1464_v49, %v1459_v48 }
 0xa78   :  { %v1471_v51 = vmax.f32 %v1469_v50, 0.0 }
 0xa7a   :  { %1738 = vrot.lane.b32.xlu1 %v3518_v61, %s3233_s0 }
 0xa7e   :  { %1746 = vrot.lane.b32.xlu1 %v1733_v44, %s3228_s10 }
 0xae8   :  { %v1475_v53 = vpop.permute.xlu1 %1474 }
 0xae9   :  { %v3569_v55 = vsel %vm278_vm7, %v1471_v51, %v1475_v53 }
 0xaea   :  { %2800 = vmatpush3.msra.mxu1 %v3569_v55 }
 0xaeb   :  { %2802 = vmatmul.mubr.msk.f32.vlgmr.msra.gmra.mrb[20].mxu1 %vm145_vm4, %v3416_v45  ;;  %2804 = vmatprep.subr.mxu1 %v3237_v31 }
 0xaec   :  { %2806 = vmatprep.mubr.msk.f32.mxu1 %vm3238_vm6, %v3237_v31  ;;  %v1739_v58 = vpop.permute.xlu1 %1738 }
 0xaed   :  { %v1751_v2 = vsel %vm142_vm3, %v3466_v17, %v1739_v58 }
 0xaf0   :  { %v1747_v3 = vpop.permute.xlu1 %1746 }
 0xaf1   :  { %v1753_v11 = vsel %vm145_vm4, %v1751_v2, %v1747_v3 }
 0xbbe   :  { %v3580_v63 = vpop.f32.mrb[20].mxu1 }
 0xbbf   :  { %v2803_v0 = vpop.f32.mrb[21].mxu1  ;;  %2805 = vmatpush3.msra.mxu1 %v3580_v63 }
 0xbc0   :  { %2807 = vmatmul.mubr.msk.f32.vlgmr.msra.gmra.mrb[22].mxu1 %vm145_vm4, %v3416_v45  ;;  %2962 = vmatprep.subr.msk.bf16.mxu1 %vm3372_vm2, %v3370_v6 }
 0xbc1   :  { %2965 = vmatpush3.bf16.msk.msra.mxu1 %vm3372_vm2, %v3370_v6  ;;  %2828 = vmatprep.mubr.msk.f32.mxu1 %vm154_vm5, %v1752_v62 }
 0xbc2   :  { %2831 = vmatprep.subr.mxu1 %v3237_v31 }
 0xbc4   :  { %2829 = vmatmul.mubr.msk.f32.vlgmr.msra.gmra.mrb[24].mxu1 %vm154_vm5, %v1753_v11 }
 0xbc5   :  { %2833 = vmatprep.mubr.msk.f32.mxu1 %vm3238_vm6, %v3237_v31 }
 0xc93   :  { %v3599_v17 = vpop.f32.mrb[22].mxu1 }
 0xc94   :  { %v2808_v5 = vpop.f32.mrb[23].mxu1 }
 0xc97   :  { %v2830_v9 = vpop.f32.mrb[24].mxu1 }
 0xc98   :  { %v1832_v10 = vadd.f32 %v2830_v9, %v3392_v18  ;;  %v1826_v12 = vpop.f32.mrb[25].mxu1  ;;  %v104_v9 = vld [vmem:[#allocation10] sm:$0xff] }
 0xc99   :  { %v1827_v13 = vadd.f32 %v3392_v18, %v1826_v12 }
 0xc9a   :  { %v2586_v14 = vmul.f32 -1.442695, %v1832_v10  ;;  %1861 = vrot.lane.b32.xlu1 %v1832_v10, %s3235_s5 }
 0xc9b   :  { %v2585_v16 = vmul.f32 -1.442695, %v1827_v13 }
 0xc9c   :  { %3045 = vpow2.f32 %v2586_v14  ;;  %v107_v14 = vld [vmem:[#allocation10 + $0x18] sm:$0xff] }
 0xc9d   :  { %3047 = vpow2.f32 %v2585_v16 }
 0xc9e   :  { %1859 = vrot.lane.b32.xlu1 %v1827_v13, %s3235_s5 }
 0xca2   :  { %2132 = vrot.lane.b32.xlu1 %v1732_v37, %s3233_s0 }
 0xca6   :  { %v3046_v19 = vpop.eup %3045  ;;  %2140 = vrot.lane.b32.xlu1 %v2128_v24, %s3228_s10 }
 0xca7   :  { %v3048_v20 = vpop.eup %3047  ;;  %v1842_v32 = vadd.f32 1.0, %v3046_v19  ;;  %v108_v19 = vld [vmem:[#allocation10 + $0x20] sm:$0xff] }
 0xca8   :  { %v1841_v21 = vadd.f32 1.0, %v3048_v20  ;;  %v109_v20 = vld [vmem:[#allocation10 + $0x28] sm:$0xff] }
 0xca9   :  { %3049 = vrcp.f32 %v1842_v32  ;;  %v3683_v32 = vpack.c.bf16 %v109_v20, %v108_v19 }
 0xcaa   :  { %3051 = vrcp.f32 %v1841_v21 }
 0xcb3   :  { %v3050_v22 = vpop.eup %3049 }
 0xcb4   :  { %1851 = vrot.lane.b32.xlu0 %v3050_v22, %s3236_s21  ;;  %v3052_v23 = vpop.eup %3051 }
 0xcb8   :  { %1849 = vrot.lane.b32.xlu0 %v3052_v23, %s3236_s21 }
 0xd0c   :  { %v1862_v28 = vpop.permute.xlu1 %1861 }
 0xd10   :  { %v1860_v1 = vpop.permute.xlu1 %1859 }
 0xd14   :  { %v2133_v42 = vpop.permute.xlu1 %2132 }
 0xd18   :  { %v2141_v47 = vpop.permute.xlu1 %2140 }
 0xd26   :  { %v1852_v26 = vpop.permute.xlu0 %1851 }
 0xd27   :  { %v1856_v27 = vmul.f32 %v1852_v26, %v1832_v10  ;;  %v105_v10 = vld [vmem:[#allocation10 + $0x8] sm:$0xff]  ;;  %v423_v26 = vmul.f32 2.0, %v3449_v57 }
 0xd28   :  { %v3675_v12 = vpack.c.bf16 %v105_v10, %v104_v9 }
 0xd29   :  { %v1866_v29 = vadd.f32 %v1862_v28, %v1856_v27  ;;  %v424_v28 = vsub.f32 %v423_v26, %v3419_v46 }
 0xd2a   :  { %v1850_v35 = vpop.permute.xlu0 %1849  ;;  %2895 = vmatprep.subr.bf16.mxu0 %v3675_v12 }
 0xd2b   :  { %v1868_v30 = vmax.f32 %v1866_v29, 0.0  ;;  %v1855_v36 = vmul.f32 %v1850_v35, %v1827_v13  ;;  %2897 = vmatpush3.bf16.msra.mxu0 %v3675_v12  ;;  %v106_v13 = vld [vmem:[#allocation10 + $0x10] sm:$0xff]  ;;  %v826_v29 = vmul.f32 2.0, %v3501_v4  ;;  %v1618_v35 = vmul.f32 2.0, %v3599_v17 }
 0xd2c   :  { %v3679_v16 = vpack.c.bf16 %v107_v14, %v106_v13 }
 0xd2d   :  { %1870 = vrot.lane.b32.xlu0 %v1868_v30, %s3239_s22  ;;  %v1865_v37 = vadd.f32 %v1860_v1, %v1855_v36  ;;  %v827_v30 = vsub.f32 %v826_v29, %v3471_v25  ;;  %v1619_v4 = vsub.f32 %v1618_v35, %v3569_v55 }
 0xd2e   :  { %2899 = vmatprep.subr.bf16.mxu0 %v3679_v16 }
 0xd2f   :  { %v1867_v39 = vmax.f32 %v1865_v37, 0.0  ;;  %2901 = vmatpush3.bf16.msra.mxu0 %v3679_v16 }
 0xd30   :  { %2903 = vmatprep.subr.bf16.mxu0 %v3683_v32 }
 0xd31   :  { %2134 = vrot.lane.b32.xlu0 %v1733_v44, %s3233_s0  ;;  %v2146_v44 = vsel %vm142_vm3, %v3511_v54, %v2133_v42 }
 0xd32   :  { %v2148_v48 = vsel %vm145_vm4, %v2146_v44, %v2141_v47 }
 0xd33   :  { %2905 = vmatpush3.bf16.msra.mxu0 %v3683_v32 }
 0xd34   :  { %2913 = vmatprep.subr.bf16.mxu0 %v3675_v12 }
 0xd35   :  { %2142 = vrot.lane.b32.xlu0 %v2129_v34, %s3228_s10  ;;  %v1222_v34 = vmul.f32 2.0, %v3553_v38 }
 0xd37   :  { %v1223_v57 = vsub.f32 %v1222_v34, %v3523_v8 }
 0xd9f   :  { %v1871_v40 = vpop.permute.xlu0 %1870 }
 0xda0   :  { %v3613_v41 = vsel %vm278_vm7, %v1867_v39, %v1871_v40 }
 0xda1   :  { %2832 = vmatpush3.msra.mxu1 %v3613_v41 }
 0xda2   :  { %2834 = vmatmul.mubr.msk.f32.vlgmr.msra.gmra.mrb[26].mxu1 %vm145_vm4, %v3416_v45  ;;  %2836 = vmatprep.subr.mxu1 %v3237_v31 }
 0xda3   :  { %2838 = vmatprep.mubr.msk.f32.mxu1 %vm3238_vm6, %v3237_v31  ;;  %v2135_v43 = vpop.permute.xlu0 %2134 }
 0xda4   :  { %v2147_v51 = vsel %vm142_vm3, %v3518_v61, %v2135_v43 }
 0xda7   :  { %v2143_v53 = vpop.permute.xlu0 %2142 }
 0xda8   :  { %v2149_v54 = vsel %vm145_vm4, %v2147_v51, %v2143_v53 }
 0xe75   :  { %v3624_v49 = vpop.f32.mrb[26].mxu1 }
 0xe76   :  { %v2835_v50 = vpop.f32.mrb[27].mxu1  ;;  %2837 = vmatpush3.msra.mxu1 %v3624_v49 }
 0xe77   :  { %2839 = vmatmul.mubr.msk.f32.vlgmr.msra.gmra.mrb[28].mxu1 %vm145_vm4, %v3416_v45  ;;  %2980 = vmatprep.subr.msk.bf16.mxu1 %vm3372_vm2, %v3370_v6 }
 0xe78   :  { %2983 = vmatpush3.bf16.msk.msra.mxu1 %vm3372_vm2, %v3370_v6  ;;  %2860 = vmatprep.mubr.msk.f32.mxu1 %vm154_vm5, %v2148_v48 }
 0xe79   :  { %2863 = vmatprep.subr.mxu1 %v3237_v31 }
 0xe7b   :  { %2861 = vmatmul.mubr.msk.f32.vlgmr.msra.gmra.mrb[30].mxu1 %vm154_vm5, %v2149_v54 }
 0xe7c   :  { %2865 = vmatprep.mubr.msk.f32.mxu1 %vm3238_vm6, %v3237_v31 }
 0xf4a   :  { %v3643_v61 = vpop.f32.mrb[28].mxu1 }
 0xf4b   :  { %v2840_v56 = vpop.f32.mrb[29].mxu1  ;;  %v2014_v36 = vmul.f32 2.0, %v3643_v61 }
 0xf4d   :  { %v2015_v38 = vsub.f32 %v2014_v36, %v3613_v41 }
 0xf4e   :  { %v2862_v58 = vpop.f32.mrb[30].mxu1 }
 0xf4f   :  { %v2228_v59 = vadd.f32 %v2862_v58, %v3392_v18  ;;  %v2222_v60 = vpop.f32.mrb[31].mxu1 }
 0xf50   :  { %v3647_v6 = vadd.f32 %v3392_v18, %v2222_v60 }
 0xf51   :  { %v2595_v7 = vmul.f32 -1.442695, %v2228_v59  ;;  %2257 = vrot.lane.b32.xlu0 %v2228_v59, %s3235_s5 }
 0xf52   :  { %v2594_v62 = vmul.f32 -1.442695, %v3647_v6 }
 0xf53   :  { %3053 = vpow2.f32 %v2595_v7 }
 0xf54   :  { %3055 = vpow2.f32 %v2594_v62 }
 0xf55   :  { %2255 = vrot.lane.b32.xlu0 %v3647_v6, %s3235_s5 }
 0xf59   :  { %426 = vrot.lane.b32.xlu0 %v3430_v52, %s3239_s22 }
 0xf5d   :  { %v3054_v0 = vpop.eup %3053  ;;  %437 = vrot.lane.b32.xlu0 %v3419_v46, %s3236_s21 }
 0xf5e   :  { %v3056_v2 = vpop.eup %3055  ;;  %v2238_v18 = vadd.f32 1.0, %v3054_v0 }
 0xf5f   :  { %v2237_v3 = vadd.f32 1.0, %v3056_v2 }
 0xf60   :  { %3057 = vrcp.f32 %v2238_v18 }
 0xf61   :  { %829 = vrot.lane.b32.xlu0 %v3482_v33, %s3239_s22  ;;  %3059 = vrcp.f32 %v2237_v3 }
 0xf65   :  { %839 = vrot.lane.b32.xlu0 %v3471_v25, %s3236_s21 }
 0xf69   :  { %1225 = vrot.lane.b32.xlu0 %v3534_v15, %s3239_s22 }
 0xf6a   :  { %v3058_v11 = vpop.eup %3057 }
 0xf6b   :  { %2247 = vrot.lane.b32.xlu1 %v3058_v11, %s3236_s21  ;;  %v3060_v5 = vpop.eup %3059 }
 0xf6d   :  { %1235 = vrot.lane.b32.xlu0 %v3523_v8, %s3236_s21 }
 0xf6f   :  { %2245 = vrot.lane.b32.xlu1 %v3060_v5, %s3236_s21 }
 0xf71   :  { %1621 = vrot.lane.b32.xlu0 %v3580_v63, %s3239_s22 }
 0xf75   :  { %1631 = vrot.lane.b32.xlu0 %v3569_v55, %s3236_s21 }
 0xf79   :  { %2017 = vrot.lane.b32.xlu0 %v3624_v49, %s3239_s22 }
 0xf7d   :  { %2027 = vrot.lane.b32.xlu0 %v3613_v41, %s3236_s21 }
 0xfc3   :  { %v2258_v23 = vpop.permute.xlu0 %2257 }
 0xfc7   :  { %v2256_v1 = vpop.permute.xlu0 %2255 }
 0xfcb   :  { %v427_v39 = vpop.permute.xlu0 %426 }
 0xfcc   :  { %v433_v48 = vsel %vm278_vm7, %v3419_v46, %v427_v39 }
 0xfcf   :  { %v438_v42 = vpop.permute.xlu0 %437 }
 0xfd0   :  { %v443_v54 = vsel %vm278_vm7, %v438_v42, %v3430_v52 }
 0xfd3   :  { %v830_v51 = vpop.permute.xlu0 %829 }
 0xfd4   :  { %v836_v46 = vsel %vm278_vm7, %v3471_v25, %v830_v51 }
 0xfd7   :  { %v840_v58 = vpop.permute.xlu0 %839 }
 0xfdb   :  { %v1226_v60 = vpop.permute.xlu0 %1225 }
 0xfdc   :  { %v1232_v25 = vsel %vm278_vm7, %v3523_v8, %v1226_v60 }
 0xfdd   :  { %v2248_v21 = vpop.permute.xlu1 %2247 }
 0xfde   :  { %v2252_v22 = vmul.f32 %v2248_v21, %v2228_v59 }
 0xfdf   :  { %v1236_v2 = vpop.permute.xlu0 %1235 }
 0xfe0   :  { %v2262_v24 = vadd.f32 %v2258_v23, %v2252_v22  ;;  %v1241_v3 = vsel %vm278_vm7, %v1236_v2, %v3534_v15 }
 0xfe1   :  { %v2246_v37 = vpop.permute.xlu1 %2245 }
 0xfe2   :  { %v2264_v27 = vmax.f32 %v2262_v24, 0.0  ;;  %v2251_v17 = vmul.f32 %v2246_v37, %v3647_v6  ;;  %v845_v6 = vsel %vm278_vm7, %v840_v58, %v3482_v33 }
 0xfe3   :  { %v1622_v8 = vpop.permute.xlu0 %1621 }
 0xfe4   :  { %2266 = vrot.lane.b32.xlu1 %v2264_v27, %s3239_s22  ;;  %v2261_v40 = vadd.f32 %v2256_v1, %v2251_v17  ;;  %v1628_v11 = vsel %vm278_vm7, %v3569_v55, %v1622_v8 }
 0xfe6   :  { %v2263_v43 = vmax.f32 %v2261_v40, 0.0 }
 0xfe7   :  { %v1632_v10 = vpop.permute.xlu0 %1631 }
 0xfe8   :  { %430 = vrot.lane.b32.xlu1 %v424_v28, %s3240_s23  ;;  %v1637_v14 = vsel %vm278_vm7, %v1632_v10, %v3580_v63 }
 0xfeb   :  { %v2018_v15 = vpop.permute.xlu0 %2017 }
 0xfec   :  { %440 = vrot.lane.b32.xlu1 %v424_v28, %s3239_s22  ;;  %v2024_v19 = vsel %vm278_vm7, %v3613_v41, %v2018_v15 }
 0xfef   :  { %v2028_v63 = vpop.permute.xlu0 %2027 }
 0xff0   :  { %833 = vrot.lane.b32.xlu1 %v827_v30, %s3240_s23  ;;  %v2033_v41 = vsel %vm278_vm7, %v2028_v63, %v3624_v49 }
 0xff4   :  { %842 = vrot.lane.b32.xlu1 %v827_v30, %s3239_s22 }
 0xff8   :  { %1229 = vrot.lane.b32.xlu1 %v1223_v57, %s3240_s23 }
 0xffc   :  { %1238 = vrot.lane.b32.xlu1 %v1223_v57, %s3239_s22 }
0x1000   :  { %1625 = vrot.lane.b32.xlu1 %v1619_v4, %s3240_s23 }
0x1004   :  { %1634 = vrot.lane.b32.xlu1 %v1619_v4, %s3239_s22 }
0x1008   :  { %2021 = vrot.lane.b32.xlu1 %v2015_v38, %s3240_s23 }
0x100c   :  { %2030 = vrot.lane.b32.xlu1 %v2015_v38, %s3239_s22 }
0x1056   :  { %v2267_v44 = vpop.permute.xlu1 %2266 }
0x1057   :  { %v3711_v47 = vsel %vm278_vm7, %v2263_v43, %v2267_v44 }
0x1058   :  { %2864 = vmatpush3.msra.mxu1 %v3711_v47 }
0x1059   :  { %2866 = vmatmul.mubr.msk.f32.vlgmr.msra.gmra.mrb[32].mxu1 %vm145_vm4, %v3416_v45  ;;  %2868 = vmatprep.subr.mxu1 %v3237_v31 }
0x105a   :  { %v431_v50 = vpop.permute.xlu1 %430  ;;  %2870 = vmatprep.mubr.msk.f32.mxu1 %vm3238_vm6, %v3237_v31 }
0x105b   :  { %v435_v53 = vsel %vm434_vm8, %v433_v48, %v431_v50 }
0x105c   :  { %2725 = vmatprep.mubr.msk.f32.mxu0 %vm451_vm9, %v435_v53 }
0x105e   :  { %v441_v61 = vpop.permute.xlu1 %440 }
0x105f   :  { %v444_v56 = vsel %vm434_vm8, %v443_v54, %v441_v61 }
0x1060   :  { %2726 = vmatmul.mubr.msk.f32.vlgmr.msra.gmra.mrb[0].mxu0 %vm451_vm9, %v444_v56 }
0x1061   :  { %2915 = vmatpush3.bf16.msra.mxu0 %v3675_v12 }
0x1062   :  { %v834_v31 = vpop.permute.xlu1 %833  ;;  %2917 = vmatprep.subr.bf16.mxu0 %v3679_v16 }
0x1063   :  { %v837_v59 = vsel %vm434_vm8, %v836_v46, %v834_v31 }
0x1064   :  { %2757 = vmatprep.mubr.msk.f32.mxu0 %vm451_vm9, %v837_v59 }
0x1065   :  { %2919 = vmatpush3.bf16.msra.mxu0 %v3679_v16 }
0x1066   :  { %v843_v52 = vpop.permute.xlu1 %842  ;;  %2921 = vmatprep.subr.bf16.mxu0 %v3683_v32 }
0x1067   :  { %v846_v62 = vsel %vm434_vm8, %v845_v6, %v843_v52 }
0x1069   :  { %2923 = vmatpush3.bf16.msra.mxu0 %v3683_v32 }
0x106a   :  { %v1230_v7 = vpop.permute.xlu1 %1229  ;;  %2931 = vmatprep.subr.bf16.mxu0 %v3675_v12 }
0x106b   :  { %v1233_v0 = vsel %vm434_vm8, %v1232_v25, %v1230_v7 }
0x106c   :  { %2758 = vmatmul.mubr.msk.f32.vlgmr.msra.gmra.mrb[2].mxu0 %vm451_vm9, %v846_v62 }
0x106d   :  { %2933 = vmatpush3.bf16.msra.mxu0 %v3675_v12  ;;  %2789 = vmatprep.mubr.msk.f32.mxu0 %vm451_vm9, %v1233_v0 }
0x106e   :  { %2935 = vmatprep.subr.bf16.mxu0 %v3679_v16  ;;  %v1239_v33 = vpop.permute.xlu1 %1238 }
0x106f   :  { %v1242_v5 = vsel %vm434_vm8, %v1241_v3, %v1239_v33 }
0x1071   :  { %2937 = vmatpush3.bf16.msra.mxu0 %v3679_v16 }
0x1072   :  { %2939 = vmatprep.subr.bf16.mxu0 %v3683_v32  ;;  %v1626_v18 = vpop.permute.xlu1 %1625 }
0x1073   :  { %v1629_v9 = vsel %vm434_vm8, %v1628_v11, %v1626_v18 }
0x1075   :  { %2941 = vmatpush3.bf16.msra.mxu0 %v3683_v32 }
0x1076   :  { %2949 = vmatprep.subr.bf16.mxu0 %v3675_v12  ;;  %v1635_v13 = vpop.permute.xlu1 %1634 }
0x1077   :  { %v1638_v20 = vsel %vm434_vm8, %v1637_v14, %v1635_v13 }
0x1078   :  { %2790 = vmatmul.mubr.msk.f32.vlgmr.msra.gmra.mrb[4].mxu0 %vm451_vm9, %v1242_v5 }
0x1079   :  { %2951 = vmatpush3.bf16.msra.mxu0 %v3675_v12  ;;  %2821 = vmatprep.mubr.msk.f32.mxu0 %vm451_vm9, %v1629_v9 }
0x107a   :  { %2953 = vmatprep.subr.bf16.mxu0 %v3679_v16  ;;  %v2022_v55 = vpop.permute.xlu1 %2021 }
0x107b   :  { %v2025_v21 = vsel %vm434_vm8, %v2024_v19, %v2022_v55 }
0x107d   :  { %2955 = vmatpush3.bf16.msra.mxu0 %v3679_v16 }
0x107e   :  { %2957 = vmatprep.subr.bf16.mxu0 %v3683_v32  ;;  %v2031_v22 = vpop.permute.xlu1 %2030 }
0x107f   :  { %v2034_v23 = vsel %vm434_vm8, %v2033_v41, %v2031_v22 }
0x1081   :  { %2959 = vmatpush3.bf16.msra.mxu0 %v3683_v32 }
0x1082   :  { %2967 = vmatprep.subr.bf16.mxu0 %v3675_v12 }
0x1084   :  { %2822 = vmatmul.mubr.msk.f32.vlgmr.msra.gmra.mrb[6].mxu0 %vm451_vm9, %v1638_v20 }
0x1085   :  { %2969 = vmatpush3.bf16.msra.mxu0 %v3675_v12  ;;  %2853 = vmatprep.mubr.msk.f32.mxu0 %vm451_vm9, %v2025_v21 }
0x1086   :  { %2971 = vmatprep.subr.bf16.mxu0 %v3679_v16 }
0x1089   :  { %2973 = vmatpush3.bf16.msra.mxu0 %v3679_v16 }
0x108a   :  { %2975 = vmatprep.subr.bf16.mxu0 %v3683_v32 }
0x108d   :  { %2977 = vmatpush3.bf16.msra.mxu0 %v3683_v32 }
0x108e   :  { %2985 = vmatprep.subr.bf16.mxu0 %v3675_v12 }
0x1090   :  { %2854 = vmatmul.mubr.msk.f32.vlgmr.msra.gmra.mrb[8].mxu0 %vm451_vm9, %v2034_v23 }
0x1091   :  { %2987 = vmatpush3.bf16.msra.mxu0 %v3675_v12  ;;  %v2552_v12 = vld [vmem:[#allocation11] ss:$0 sm:$0xff] }
0x1092   :  { %2989 = vmatprep.subr.bf16.mxu0 %v3679_v16 }
0x1095   :  { %2991 = vmatpush3.bf16.msra.mxu0 %v3679_v16 }
0x1096   :  { %2993 = vmatprep.subr.bf16.mxu0 %v3683_v32 }
0x1099   :  { %2995 = vmatpush3.bf16.msra.mxu0 %v3683_v32 }
0x112c   :  { %v2336_v24 = vpop.f32.mrb[32].mxu1 }
0x112d   :  { %2413 = vrot.lane.b32.xlu0 %v2336_v24, %s3239_s22  ;;  %v2867_v49 = vpop.f32.mrb[33].mxu1  ;;  %2869 = vmatpush3.msra.mxu1 %v2336_v24 }
0x112e   :  { %2871 = vmatmul.mubr.msk.f32.vlgmr.msra.gmra.mrb[34].mxu1 %vm145_vm4, %v3416_v45 }
0x1131   :  { %2423 = vrot.lane.b32.xlu0 %v3711_v47, %s3236_s21 }
0x1133   :  { %v2727_v26 = vpop.f32.mrb[0].mxu0 }
0x1134   :  { %v530_v27 = vadd.f32 %v2727_v26, %v2552_v12  ;;  %v524_v28 = vpop.f32.mrb[1].mxu0 }
0x1135   :  { %v525_v16 = vadd.f32 %v2552_v12, %v524_v28 }
0x1136   :  { %v534_v29 = vmax.f32 %v530_v27, 0.0 }
0x1137   :  { %v533_v30 = vmax.f32 %v525_v16, 0.0 }
0x1138   :  { %536 = vst.msk [vmem:[#allocation13 + $0x8] sm:$0xff] %vm278_vm7, %v534_v29 }
0x1139   :  { %535 = vst.msk [vmem:[#allocation13] sm:$0xff] %vm278_vm7, %v533_v30 }
0x113f   :  { %v2759_v32 = vpop.f32.mrb[2].mxu0 }
0x1140   :  { %v925_v34 = vadd.f32 %v2759_v32, %v2552_v12  ;;  %v919_v57 = vpop.f32.mrb[3].mxu0 }
0x1141   :  { %v920_v35 = vadd.f32 %v2552_v12, %v919_v57 }
0x1142   :  { %v929_v4 = vmax.f32 %v925_v34, 0.0 }
0x1143   :  { %v928_v45 = vmax.f32 %v920_v35, 0.0 }
0x1144   :  { %932 = vst.msk [vmem:[#allocation13 + $0x18] sm:$0xff] %vm278_vm7, %v929_v4 }
0x1145   :  { %931 = vst.msk [vmem:[#allocation13 + $0x10] sm:$0xff] %vm278_vm7, %v928_v45 }
0x114b   :  { %v2791_v36 = vpop.f32.mrb[4].mxu0 }
0x114c   :  { %v1321_v38 = vadd.f32 %v2791_v36, %v2552_v12  ;;  %v1315_v1 = vpop.f32.mrb[5].mxu0 }
0x114d   :  { %v1316_v37 = vadd.f32 %v2552_v12, %v1315_v1 }
0x114e   :  { %v1325_v17 = vmax.f32 %v1321_v38, 0.0 }
0x114f   :  { %v1324_v39 = vmax.f32 %v1316_v37, 0.0 }
0x1150   :  { %1328 = vst.msk [vmem:[#allocation13 + $0x28] sm:$0xff] %vm278_vm7, %v1325_v17 }
0x1151   :  { %1327 = vst.msk [vmem:[#allocation13 + $0x20] sm:$0xff] %vm278_vm7, %v1324_v39 }
0x1157   :  { %v2823_v40 = vpop.f32.mrb[6].mxu0 }
0x1158   :  { %v1717_v42 = vadd.f32 %v2823_v40, %v2552_v12  ;;  %v1711_v43 = vpop.f32.mrb[7].mxu0 }
0x1159   :  { %v1712_v44 = vadd.f32 %v2552_v12, %v1711_v43 }
0x115a   :  { %v1721_v48 = vmax.f32 %v1717_v42, 0.0 }
0x115b   :  { %v1720_v50 = vmax.f32 %v1712_v44, 0.0 }
0x115c   :  { %1724 = vst.msk [vmem:[#allocation13 + $0x38] sm:$0xff] %vm278_vm7, %v1721_v48 }
0x115d   :  { %1723 = vst.msk [vmem:[#allocation13 + $0x30] sm:$0xff] %vm278_vm7, %v1720_v50 }
0x1163   :  { %v2855_v51 = vpop.f32.mrb[8].mxu0 }
0x1164   :  { %v2113_v53 = vadd.f32 %v2855_v51, %v2552_v12  ;;  %v2107_v54 = vpop.f32.mrb[9].mxu0 }
0x1165   :  { %v2108_v61 = vadd.f32 %v2552_v12, %v2107_v54 }
0x1166   :  { %v2117_v56 = vmax.f32 %v2113_v53, 0.0 }
0x1167   :  { %v2116_v58 = vmax.f32 %v2108_v61, 0.0 }
0x1168   :  { %2120 = vst.msk [vmem:[#allocation13 + $0x48] sm:$0xff] %vm278_vm7, %v2117_v56 }
0x1169   :  { %2119 = vst.msk [vmem:[#allocation13 + $0x40] sm:$0xff] %vm278_vm7, %v2116_v58 }
0x119f   :  { %v2414_v60 = vpop.permute.xlu0 %2413 }
0x11a0   :  { %v2420_v6 = vsel %vm278_vm7, %v3711_v47, %v2414_v60 }
0x11a3   :  { %v2424_v7 = vpop.permute.xlu0 %2423 }
0x11a4   :  { %v2429_v0 = vsel %vm278_vm7, %v2424_v7, %v2336_v24 }
0x1201   :  { %v2406_v46 = vpop.f32.mrb[34].mxu1 }
0x1202   :  { %v2410_v31 = vmul.f32 2.0, %v2406_v46  ;;  %v2872_v59 = vpop.f32.mrb[35].mxu1 }
0x1204   :  { %v2411_v52 = vsub.f32 %v2410_v31, %v3711_v47 }
0x1206   :  { %2417 = vrot.lane.b32.xlu1 %v2411_v52, %s3240_s23 }
0x120a   :  { %2426 = vrot.lane.b32.xlu1 %v2411_v52, %s3239_s22 }
0x1278   :  { %v2418_v25 = vpop.permute.xlu1 %2417 }
0x1279   :  { %v2421_v62 = vsel %vm434_vm8, %v2420_v6, %v2418_v25 }
0x127a   :  { %2885 = vmatprep.mubr.msk.f32.mxu0 %vm451_vm9, %v2421_v62 }
0x127c   :  { %v2427_v2 = vpop.permute.xlu1 %2426 }
0x127d   :  { %v2430_v33 = vsel %vm434_vm8, %v2429_v0, %v2427_v2 }
0x127e   :  { %2886 = vmatmul.mubr.msk.f32.vlgmr.msra.gmra.mrb[10].mxu0 %vm451_vm9, %v2430_v33 }
0x1351   :  { %v2887_v8 = vpop.f32.mrb[10].mxu0 }
0x1352   :  { %v2509_v18 = vadd.f32 %v2887_v8, %v2552_v12  ;;  %v2503_v3 = vpop.f32.mrb[11].mxu0 }
0x1353   :  { %v2504_v11 = vadd.f32 %v2552_v12, %v2503_v3 }
0x1354   :  { %v2513_v47 = vmax.f32 %v2509_v18, 0.0 }
0x1355   :  { %v2512_v5 = vmax.f32 %v2504_v11, 0.0 }
0x1356   :  { %2516 = vst.msk [vmem:[#allocation13 + $0x58] sm:$0xff] %vm278_vm7, %v2513_v47 }
0x1357   :  { %2515 = vst.msk [vmem:[#allocation13 + $0x50] sm:$0xff] %vm278_vm7, %v2512_v5 }
0x1358   :  { %3204 = shalt.err (!%p3201_p10)
}
0x1359   :  { %s3205_s7 = scalar_lea.hbm %s3836_s6, 1536 }
0x135a   :  { %p3206_p11 = scmp.ne.s32.totalorder %s3836_s6, %s3205_s7  ;;  %p3209_p12 = scmp.lt.u32.totalorder %s3205_s7, %s3836_s6 }
0x135c   :  { %p3211_p13 = pnand %p3209_p12, %p3206_p11 }
0x135e   :  { %3214 = shalt.err (!%p3211_p13)
}
0x135f   :  { %2528 = dma.vmem_to_hbm [thread:$0]  %s2523_s27, 1536, %s3836_s6, [#allocation4], %s3227_s9, %s3227_s9, %s3228_s10  }
0x1360   :  { %3223 = dma.done.wait [#allocation4], 1536  }
0x1361   :  { %3224 = vsyncadd [#allocation4], 4294965760 }
0x1362   :  { %2532 = vsyncpa [#allocation3], 1 }
0x1363   :  { %2533 = vsyncpa [#allocation6], 1 }
0x1364   :  { %2534 = vsyncpa [#allocation9], 1 }
0x1365   :  { %2535 = vsyncpa [#allocation12], 1 }
0x1366   :  { %2536 = vsyncpa [#allocation4], 1 }

</bundles_post_ra>
